<compile_context>
chip_gen: v5e
topology: v5e:2x2
jax: 0.10.0
libtpu: 0.0.40
codegen_flags: <defaults>
</compile_context>

<pallas_src>
import math
import numpy as np
import jax
import jax.numpy as jnp
from jax import lax
from jax.experimental import pallas as pl
from jax.experimental.pallas import tpu as pltpu

# ------------------------- hyper-parameters (small, synthetic) -------------------------
B, S, V = 2, 8, 16          # batch, sequence length, vocab
D, H, F = 32, 4, 64         # d_model, heads, d_ff
N_LAYERS, C = 2, 4          # encoder layers, output classes
HD = D // H                 # per-head dim
LN_EPS = 1e-6
SCALE = 1.0 / math.sqrt(HD)
QKV_PAD = 128               # fused QKV projection width padded to a full lane tile
CLS_PAD = 128               # classifier logits padded to a full lane tile (unmasked store)
NEG_INF = -1e9


# ------------------------------------ Pallas kernel ------------------------------------
def encoder_stack_kernel(x_ref, mb_ref,
                         wqkv_ref, bqkv_ref, wo_ref, bo_ref,
                         w1_ref, b1_ref, w2_ref, b2_ref,
                         ln1g_ref, ln1b_ref, ln2g_ref, ln2b_ref,
                         lnfg_ref, lnfb_ref, wc_ref, bc_ref,
                         out_ref):
    """One grid program == one batch element: N-layer pre-norm encoder + CLS decode."""
    x = x_ref[0]                                   # (S, D) f32 embedded tokens
    # Hoist the (1,S)->(S,S) additive key-padding-bias broadcast out of layer/head loops.
    mbias = jnp.broadcast_to(mb_ref[0], (S, S))    # (S, S) f32, values in {0, -1e9}

    def layer_norm(v, g, b):
        # Annotated-Transformer LayerNorm: a*(x-mean)/(std+eps)+b, unbiased std (torch.std).
        mu = jnp.mean(v, axis=-1, keepdims=True)
        std = jnp.sqrt(jnp.sum((v - mu) ** 2, axis=-1, keepdims=True) / (D - 1))
        return g * (v - mu) / (std + LN_EPS) + b

    def mm(a, w):                                  # bf16 MXU matmul, f32 accumulation
        return jnp.dot(a.astype(jnp.bfloat16), w, preferred_element_type=jnp.float32)

    def layer(l, x):
        # ------------------- self-attention sublayer (pre-norm + residual) -------------
        xn = layer_norm(x, ln1g_ref[l], ln1b_ref[l])
        # Fused QKV; 1/sqrt(HD) is pre-folded into the Q columns of wqkv/bqkv (wrapper).
        qkv = (mm(xn, wqkv_ref[l]) + bqkv_ref[l]).astype(jnp.bfloat16)  # (S,128) one cast
        ctxs = []
        for h in range(H):                          # static loop: static lane slices
            q = qkv[:, h * HD:(h + 1) * HD]
            k = qkv[:, D + h * HD:D + (h + 1) * HD]
            v = qkv[:, 2 * D + h * HD:2 * D + (h + 1) * HD]
            s = lax.dot_general(q, k, (((1,), (1,)), ((), ())),
                                preferred_element_type=jnp.float32) + mbias   # (S, S)
            s = s - jnp.max(s, axis=-1, keepdims=True)
            p = jnp.exp(s)
            p = p * pl.reciprocal(jnp.sum(p, axis=-1, keepdims=True), approx=True)
            ctxs.append(jnp.dot(p.astype(jnp.bfloat16), v,
                                preferred_element_type=jnp.float32))          # (S, HD)
        ctx = jnp.concatenate(ctxs, axis=-1)        # (S, H*HD) = (S, D)
        x = x + mm(ctx, wo_ref[l]) + bo_ref[l]      # single output projection

        # ------------------- feed-forward sublayer (pre-norm + residual) ---------------
        xn = layer_norm(x, ln2g_ref[l], ln2b_ref[l])
        hdn = jnp.maximum(mm(xn, w1_ref[l]) + b1_ref[l], 0.0)
        return x + mm(hdn, w2_ref[l]) + b2_ref[l]

    x = lax.fori_loop(0, N_LAYERS, layer, x, unroll=True)

    # ---- final LayerNorm (CLS row only) -> Linear (padded to 128 lanes) -> log_softmax --
    cls = layer_norm(x[0:1, :], lnfg_ref[...], lnfb_ref[...])          # (1, D)
    logits = mm(cls, wc_ref[...]) + bc_ref[...]                        # (1, 128): [C | -1e9 pad]
    z = logits - jnp.max(logits, axis=-1, keepdims=True)
    logp = z - jnp.log(jnp.sum(jnp.exp(z), axis=-1, keepdims=True))    # pad lanes -> ~-1e9
    out_ref[...] = logp.reshape(1, 1, CLS_PAD)                         # lane-dense unmasked store


# ----------------------------------- glue / wrapper ------------------------------------
def sinusoidal_pe(seq_len, d_model):
    pos = np.arange(seq_len)[:, None].astype(np.float32)
    div = np.exp(np.arange(0, d_model, 2).astype(np.float32) * (-math.log(10000.0) / d_model))
    pe = np.zeros((seq_len, d_model), np.float32)
    pe[:, 0::2] = np.sin(pos * div)
    pe[:, 1::2] = np.cos(pos * div)
    return jnp.asarray(pe)


def init_params(key):
    ks = jax.random.split(key, 10)

    def nrm(k, shape, scale=0.1):
        return jax.random.normal(k, shape, jnp.float32) * scale

    return dict(
        emb=nrm(ks[0], (V, D), 1.0 / math.sqrt(D)),
        wqkv=nrm(ks[1], (N_LAYERS, D, 3 * D)),
        bqkv=nrm(ks[2], (N_LAYERS, 1, 3 * D), 0.02),
        wo=nrm(ks[3], (N_LAYERS, D, D)),
        bo=nrm(ks[4], (N_LAYERS, 1, D), 0.02),
        w1=nrm(ks[5], (N_LAYERS, D, F)),
        b1=nrm(ks[6], (N_LAYERS, 1, F), 0.02),
        w2=nrm(ks[7], (N_LAYERS, F, D)),
        b2=nrm(ks[8], (N_LAYERS, 1, D), 0.02),
        ln1_g=jnp.ones((N_LAYERS, 1, D), jnp.float32),
        ln1_b=jnp.zeros((N_LAYERS, 1, D), jnp.float32),
        ln2_g=jnp.ones((N_LAYERS, 1, D), jnp.float32),
        ln2_b=jnp.zeros((N_LAYERS, 1, D), jnp.float32),
        lnf_g=jnp.ones((1, D), jnp.float32),
        lnf_b=jnp.zeros((1, D), jnp.float32),
        wc=nrm(ks[9], (D, C)),
        bc=jnp.zeros((1, C), jnp.float32),
    )


def transformer_forward(src, src_mask, params):
    """src: (B, S) int32 token ids; src_mask: (B, S) 1=keep / 0=mask.  Returns (B, C) log-probs."""
    # Embedding gather + positional encoding done in XLA (cheap gather, removes in-kernel one-hot).
    pe = sinusoidal_pe(S, D)
    x0 = (params['emb'][src] * jnp.float32(math.sqrt(D)) + pe[None]).astype(jnp.float32)  # (B,S,D)
    mbias = jnp.where(src_mask[:, None, :] > 0, 0.0, NEG_INF).astype(jnp.float32)         # (B,1,S)

    # Fused + lane-padded QKV projection.  Fold the 1/sqrt(HD) attention scale into the Q
    # columns (constant weight prep, not an activation pre-scale).  Matmul weights -> bf16.
    wqkv = params['wqkv'].at[:, :, :D].multiply(SCALE)
    bqkv = params['bqkv'].at[:, :, :D].multiply(SCALE)
    pad = QKV_PAD - 3 * D
    wqkv = jnp.pad(wqkv, ((0, 0), (0, 0), (0, pad))).astype(jnp.bfloat16)   # (L, D, 128)
    bqkv = jnp.pad(bqkv, ((0, 0), (0, 0), (0, pad)))                        # (L, 1, 128)

    # Classifier padded to a full 128-lane tile; padded logits get a -1e9 bias so the
    # in-kernel log_softmax over 128 lanes equals log_softmax over the real C lanes.
    wc = jnp.pad(params['wc'], ((0, 0), (0, CLS_PAD - C))).astype(jnp.bfloat16)      # (D, 128)
    bc = jnp.pad(params['bc'], ((0, 0), (0, CLS_PAD - C)), constant_values=NEG_INF)  # (1, 128)

    weight_args = (wqkv, bqkv,
                   params['wo'].astype(jnp.bfloat16), params['bo'],
                   params['w1'].astype(jnp.bfloat16), params['b1'],
                   params['w2'].astype(jnp.bfloat16), params['b2'],
                   params['ln1_g'], params['ln1_b'],
                   params['ln2_g'], params['ln2_b'],
                   params['lnf_g'], params['lnf_b'],
                   wc, bc)

    def resident_spec(a):
        nd = a.ndim
        return pl.BlockSpec(a.shape, lambda b, _nd=nd: (0,) * _nd)

    in_specs = ([pl.BlockSpec((1, S, D), lambda b: (b, 0, 0)),     # per-batch activations
                 pl.BlockSpec((1, 1, S), lambda b: (b, 0, 0))]     # per-batch mask bias
                + [resident_spec(a) for a in weight_args])

    out = pl.pallas_call(
        encoder_stack_kernel,
        out_shape=jax.ShapeDtypeStruct((B, 1, CLS_PAD), jnp.float32),
        grid_spec=pltpu.PrefetchScalarGridSpec(
            num_scalar_prefetch=0,
            grid=(B,),
            in_specs=in_specs,
            out_specs=pl.BlockSpec((1, 1, CLS_PAD), lambda b: (b, 0, 0)),
        ),
        compiler_params=pltpu.CompilerParams(
            dimension_semantics=("parallel",)),    # batches shard across TensorCores on v7x
    )(x0, mbias, *weight_args)
    return out[:, 0, :C]                           # strip lane padding


# ------------------------------- pure-JAX reference ------------------------------------
def reference_forward(src, src_mask, params):
    def layer_norm(v, g, b):
        mu = v.mean(-1, keepdims=True)
        std = jnp.sqrt(((v - mu) ** 2).sum(-1, keepdims=True) / (D - 1))
        return g * (v - mu) / (std + LN_EPS) + b

    pe = sinusoidal_pe(S, D)
    x = params['emb'][src] * math.sqrt(D) + pe[None]                     # (B, S, D)
    kmask = src_mask[:, None, None, :]                                   # (B, 1, 1, S)
    for l in range(N_LAYERS):
        xn = layer_norm(x, params['ln1_g'][l], params['ln1_b'][l])
        qkv = xn @ params['wqkv'][l] + params['bqkv'][l]                 # (B, S, 3D)
        q, k, v = qkv[..., :D], qkv[..., D:2 * D], qkv[..., 2 * D:]
        q = q.reshape(B, S, H, HD).transpose(0, 2, 1, 3)
        k = k.reshape(B, S, H, HD).transpose(0, 2, 1, 3)
        v = v.reshape(B, S, H, HD).transpose(0, 2, 1, 3)
        s = jnp.einsum('bhqd,bhkd->bhqk', q, k) * SCALE
        s = jnp.where(kmask > 0, s, NEG_INF)
        p = jax.nn.softmax(s, axis=-1)
        ctx = jnp.einsum('bhqk,bhkd->bhqd', p, v).transpose(0, 2, 1, 3).reshape(B, S, D)
        x = x + ctx @ params['wo'][l] + params['bo'][l]
        xn = layer_norm(x, params['ln2_g'][l], params['ln2_b'][l])
        hdn = jnp.maximum(xn @ params['w1'][l] + params['b1'][l], 0.0)
        x = x + hdn @ params['w2'][l] + params['b2'][l]
    x = layer_norm(x, params['lnf_g'], params['lnf_b'])
    logits = x[:, 0, :] @ params['wc'] + params['bc']
    return jax.nn.log_softmax(logits, axis=-1)


if __name__ == "__main__":
    key = jax.random.PRNGKey(0)
    kp, ks_ = jax.random.split(key)
    params = init_params(kp)
    src = jax.random.randint(ks_, (B, S), 0, V, dtype=jnp.int32)
    src_mask = jnp.ones((B, S), jnp.float32).at[1, 6:].set(0.0)   # mask last 2 keys of batch 1

    out = jax.block_until_ready(transformer_forward(src, src_mask, params))
    ref = reference_forward(src, src_mask, params)

    assert out.shape == (B, C)
    assert bool(jnp.all(jnp.isfinite(out)))
    np.testing.assert_allclose(np.asarray(out), np.asarray(ref), atol=3e-2, rtol=3e-2)
    print("KERNEL_OK")
</pallas_src>

<mosaic_0001>
module attributes {stable_mosaic.version = 11 : i64} {
  func.func @encoder_stack_kernel(%arg0: i32, %arg1: memref<1x8x32xf32, #tpu.memory_space<vmem>>, %arg2: memref<1x1x8xf32, #tpu.memory_space<vmem>>, %arg3: memref<2x32x128xbf16, #tpu.memory_space<vmem>>, %arg4: memref<2x1x128xf32, #tpu.memory_space<vmem>>, %arg5: memref<2x32x32xbf16, #tpu.memory_space<vmem>>, %arg6: memref<2x1x32xf32, #tpu.memory_space<vmem>>, %arg7: memref<2x32x64xbf16, #tpu.memory_space<vmem>>, %arg8: memref<2x1x64xf32, #tpu.memory_space<vmem>>, %arg9: memref<2x64x32xbf16, #tpu.memory_space<vmem>>, %arg10: memref<2x1x32xf32, #tpu.memory_space<vmem>>, %arg11: memref<2x1x32xf32, #tpu.memory_space<vmem>>, %arg12: memref<2x1x32xf32, #tpu.memory_space<vmem>>, %arg13: memref<2x1x32xf32, #tpu.memory_space<vmem>>, %arg14: memref<2x1x32xf32, #tpu.memory_space<vmem>>, %arg15: memref<1x32xf32, #tpu.memory_space<vmem>>, %arg16: memref<1x32xf32, #tpu.memory_space<vmem>>, %arg17: memref<32x128xbf16, #tpu.memory_space<vmem>>, %arg18: memref<1x128xf32, #tpu.memory_space<vmem>>, %arg19: memref<1x1x128xf32, #tpu.memory_space<vmem>>) attributes {dimension_semantics = [#tpu.dimension_semantics<parallel>], iteration_bounds = array<i64: 2>, scalar_prefetch = 0 : i64, scratch_operands = 0 : i64, tpu.core_type = #tpu.core_type<tc>, window_params = [{transform_indices = @transform_0, window_bounds = array<i64: 1, 8, 32>}, {transform_indices = @transform_1, window_bounds = array<i64: 1, 1, 8>}, {pipeline_mode = #tpu.pipeline_mode<synchronous>, transform_indices = @transform_2, window_bounds = array<i64: 2, 32, 128>}, {pipeline_mode = #tpu.pipeline_mode<synchronous>, transform_indices = @transform_3, window_bounds = array<i64: 2, 1, 128>}, {pipeline_mode = #tpu.pipeline_mode<synchronous>, transform_indices = @transform_4, window_bounds = array<i64: 2, 32, 32>}, {pipeline_mode = #tpu.pipeline_mode<synchronous>, transform_indices = @transform_5, window_bounds = array<i64: 2, 1, 32>}, {pipeline_mode = #tpu.pipeline_mode<synchronous>, transform_indices = @transform_6, window_bounds = array<i64: 2, 32, 64>}, {pipeline_mode = #tpu.pipeline_mode<synchronous>, transform_indices = @transform_7, window_bounds = array<i64: 2, 1, 64>}, {pipeline_mode = #tpu.pipeline_mode<synchronous>, transform_indices = @transform_8, window_bounds = array<i64: 2, 64, 32>}, {pipeline_mode = #tpu.pipeline_mode<synchronous>, transform_indices = @transform_9, window_bounds = array<i64: 2, 1, 32>}, {pipeline_mode = #tpu.pipeline_mode<synchronous>, transform_indices = @transform_10, window_bounds = array<i64: 2, 1, 32>}, {pipeline_mode = #tpu.pipeline_mode<synchronous>, transform_indices = @transform_11, window_bounds = array<i64: 2, 1, 32>}, {pipeline_mode = #tpu.pipeline_mode<synchronous>, transform_indices = @transform_12, window_bounds = array<i64: 2, 1, 32>}, {pipeline_mode = #tpu.pipeline_mode<synchronous>, transform_indices = @transform_13, window_bounds = array<i64: 2, 1, 32>}, {pipeline_mode = #tpu.pipeline_mode<synchronous>, transform_indices = @transform_14, window_bounds = array<i64: 1, 32>}, {pipeline_mode = #tpu.pipeline_mode<synchronous>, transform_indices = @transform_15, window_bounds = array<i64: 1, 32>}, {pipeline_mode = #tpu.pipeline_mode<synchronous>, transform_indices = @transform_16, window_bounds = array<i64: 32, 128>}, {pipeline_mode = #tpu.pipeline_mode<synchronous>, transform_indices = @transform_17, window_bounds = array<i64: 1, 128>}, {transform_indices = @transform_18, window_bounds = array<i64: 1, 1, 128>}]} {
    %c0 = arith.constant 0 : index
    %c0_0 = arith.constant 0 : index
    %c0_1 = arith.constant 0 : index
    %0 = vector.load %arg1[%c0, %c0_0, %c0_1] : memref<1x8x32xf32, #tpu.memory_space<vmem>>, vector<1x8x32xf32>
    %1 = vector.shape_cast %0 : vector<1x8x32xf32> to vector<8x32xf32>
    %c0_2 = arith.constant 0 : index
    %c0_3 = arith.constant 0 : index
    %c0_4 = arith.constant 0 : index
    %2 = vector.load %arg2[%c0_2, %c0_3, %c0_4] : memref<1x1x8xf32, #tpu.memory_space<vmem>>, vector<1x1x8xf32>
    %3 = vector.shape_cast %2 : vector<1x1x8xf32> to vector<1x8xf32>
    %4 = vector.shape_cast %3 : vector<1x8xf32> to vector<1x8xf32>
    %5 = vector.broadcast %4 : vector<1x8xf32> to vector<8x8xf32>
    %c0_i32 = arith.constant 0 : i32
    %6 = arith.index_cast %c0_i32 : i32 to index
    %c0_5 = arith.constant 0 : index
    %c0_6 = arith.constant 0 : index
    %7 = vector.load %arg11[%6, %c0_5, %c0_6] : memref<2x1x32xf32, #tpu.memory_space<vmem>>, vector<1x1x32xf32>
    %8 = vector.shape_cast %7 : vector<1x1x32xf32> to vector<1x32xf32>
    %9 = arith.index_cast %c0_i32 : i32 to index
    %c0_7 = arith.constant 0 : index
    %c0_8 = arith.constant 0 : index
    %10 = vector.load %arg12[%9, %c0_7, %c0_8] : memref<2x1x32xf32, #tpu.memory_space<vmem>>, vector<1x1x32xf32>
    %11 = vector.shape_cast %10 : vector<1x1x32xf32> to vector<1x32xf32>
    %cst = arith.constant dense<0.000000e+00> : vector<8xf32>
    %12 = vector.multi_reduction <add>, %1, %cst [1] : vector<8x32xf32> to vector<8xf32>
    %13 = vector.shape_cast %12 : vector<8xf32> to vector<8x1xf32>
    %cst_9 = arith.constant 3.200000e+01 : f32
    %14 = vector.broadcast %cst_9 : f32 to vector<8x1xf32>
    %15 = arith.divf %13, %14 : vector<8x1xf32>
    %16 = vector.broadcast %15 : vector<8x1xf32> to vector<8x32xf32>
    %17 = arith.subf %1, %16 : vector<8x32xf32>
    %18 = arith.mulf %17, %17 : vector<8x32xf32>
    %cst_10 = arith.constant dense<0.000000e+00> : vector<8xf32>
    %19 = vector.multi_reduction <add>, %18, %cst_10 [1] : vector<8x32xf32> to vector<8xf32>
    %20 = vector.shape_cast %19 : vector<8xf32> to vector<8x1xf32>
    %cst_11 = arith.constant 3.100000e+01 : f32
    %21 = vector.broadcast %cst_11 : f32 to vector<8x1xf32>
    %22 = arith.divf %20, %21 : vector<8x1xf32>
    %23 = math.sqrt %22 : vector<8x1xf32>
    %24 = vector.broadcast %15 : vector<8x1xf32> to vector<8x32xf32>
    %25 = arith.subf %1, %24 : vector<8x32xf32>
    %26 = vector.broadcast %8 : vector<1x32xf32> to vector<8x32xf32>
    %27 = arith.mulf %26, %25 : vector<8x32xf32>
    %cst_12 = arith.constant 9.99999997E-7 : f32
    %28 = vector.broadcast %cst_12 : f32 to vector<8x1xf32>
    %29 = arith.addf %23, %28 : vector<8x1xf32>
    %30 = vector.broadcast %29 : vector<8x1xf32> to vector<8x32xf32>
    %31 = arith.divf %27, %30 : vector<8x32xf32>
    %32 = vector.broadcast %11 : vector<1x32xf32> to vector<8x32xf32>
    %33 = arith.addf %31, %32 : vector<8x32xf32>
    %34 = arith.index_cast %c0_i32 : i32 to index
    %c0_13 = arith.constant 0 : index
    %c0_14 = arith.constant 0 : index
    %35 = vector.load %arg3[%34, %c0_13, %c0_14] : memref<2x32x128xbf16, #tpu.memory_space<vmem>>, vector<1x32x128xbf16>
    %36 = vector.shape_cast %35 : vector<1x32x128xbf16> to vector<32x128xbf16>
    %37 = arith.truncf %33 : vector<8x32xf32> to vector<8x32xbf16>
    %cst_15 = arith.constant dense<0.000000e+00> : vector<8x128xf32>
    %38 = tpu.matmul %37, %36, %cst_15 {dimension_numbers = #tpu.dot_dimension_numbers<[1], [0], [0], [1], [0, 0, 1, 1], [], []>} : vector<8x32xbf16>, vector<32x128xbf16>, vector<8x128xf32> -> vector<8x128xf32>
    %39 = arith.index_cast %c0_i32 : i32 to index
    %c0_16 = arith.constant 0 : index
    %c0_17 = arith.constant 0 : index
    %40 = vector.load %arg4[%39, %c0_16, %c0_17] : memref<2x1x128xf32, #tpu.memory_space<vmem>>, vector<1x1x128xf32>
    %41 = vector.shape_cast %40 : vector<1x1x128xf32> to vector<1x128xf32>
    %42 = vector.broadcast %41 : vector<1x128xf32> to vector<8x128xf32>
    %43 = arith.addf %38, %42 : vector<8x128xf32>
    %44 = arith.truncf %43 : vector<8x128xf32> to vector<8x128xbf16>
    %45 = vector.extract_strided_slice %44 {offsets = [0, 0], sizes = [8, 8], strides = [1, 1]} : vector<8x128xbf16> to vector<8x8xbf16>
    %46 = vector.extract_strided_slice %44 {offsets = [0, 32], sizes = [8, 8], strides = [1, 1]} : vector<8x128xbf16> to vector<8x8xbf16>
    %47 = vector.extract_strided_slice %44 {offsets = [0, 64], sizes = [8, 8], strides = [1, 1]} : vector<8x128xbf16> to vector<8x8xbf16>
    %cst_18 = arith.constant dense<0.000000e+00> : vector<8x8xf32>
    %48 = tpu.matmul %45, %46, %cst_18 {dimension_numbers = #tpu.dot_dimension_numbers<[1], [1], [0], [0], [0, 0, 1, 0], [], []>} : vector<8x8xbf16>, vector<8x8xbf16>, vector<8x8xf32> -> vector<8x8xf32>
    %49 = arith.addf %48, %5 : vector<8x8xf32>
    %cst_19 = arith.constant dense<0xFF800000> : vector<8xf32>
    %50 = vector.multi_reduction <maximumf>, %49, %cst_19 [1] : vector<8x8xf32> to vector<8xf32>
    %51 = vector.shape_cast %50 : vector<8xf32> to vector<8x1xf32>
    %52 = vector.broadcast %51 : vector<8x1xf32> to vector<8x8xf32>
    %53 = arith.subf %49, %52 : vector<8x8xf32>
    %54 = math.exp %53 : vector<8x8xf32>
    %cst_20 = arith.constant dense<0.000000e+00> : vector<8xf32>
    %55 = vector.multi_reduction <add>, %54, %cst_20 [1] : vector<8x8xf32> to vector<8xf32>
    %56 = vector.shape_cast %55 : vector<8xf32> to vector<8x1xf32>
    %57 = tpu.reciprocal %56 {approx = true} : vector<8x1xf32> -> vector<8x1xf32>
    %58 = vector.broadcast %57 : vector<8x1xf32> to vector<8x8xf32>
    %59 = arith.mulf %54, %58 : vector<8x8xf32>
    %60 = arith.truncf %59 : vector<8x8xf32> to vector<8x8xbf16>
    %cst_21 = arith.constant dense<0.000000e+00> : vector<8x8xf32>
    %61 = tpu.matmul %60, %47, %cst_21 {dimension_numbers = #tpu.dot_dimension_numbers<[1], [0], [0], [1], [0, 0, 1, 1], [], []>} : vector<8x8xbf16>, vector<8x8xbf16>, vector<8x8xf32> -> vector<8x8xf32>
    %62 = vector.extract_strided_slice %44 {offsets = [0, 8], sizes = [8, 8], strides = [1, 1]} : vector<8x128xbf16> to vector<8x8xbf16>
    %63 = vector.extract_strided_slice %44 {offsets = [0, 40], sizes = [8, 8], strides = [1, 1]} : vector<8x128xbf16> to vector<8x8xbf16>
    %64 = vector.extract_strided_slice %44 {offsets = [0, 72], sizes = [8, 8], strides = [1, 1]} : vector<8x128xbf16> to vector<8x8xbf16>
    %cst_22 = arith.constant dense<0.000000e+00> : vector<8x8xf32>
    %65 = tpu.matmul %62, %63, %cst_22 {dimension_numbers = #tpu.dot_dimension_numbers<[1], [1], [0], [0], [0, 0, 1, 0], [], []>} : vector<8x8xbf16>, vector<8x8xbf16>, vector<8x8xf32> -> vector<8x8xf32>
    %66 = arith.addf %65, %5 : vector<8x8xf32>
    %cst_23 = arith.constant dense<0xFF800000> : vector<8xf32>
    %67 = vector.multi_reduction <maximumf>, %66, %cst_23 [1] : vector<8x8xf32> to vector<8xf32>
    %68 = vector.shape_cast %67 : vector<8xf32> to vector<8x1xf32>
    %69 = vector.broadcast %68 : vector<8x1xf32> to vector<8x8xf32>
    %70 = arith.subf %66, %69 : vector<8x8xf32>
    %71 = math.exp %70 : vector<8x8xf32>
    %cst_24 = arith.constant dense<0.000000e+00> : vector<8xf32>
    %72 = vector.multi_reduction <add>, %71, %cst_24 [1] : vector<8x8xf32> to vector<8xf32>
    %73 = vector.shape_cast %72 : vector<8xf32> to vector<8x1xf32>
    %74 = tpu.reciprocal %73 {approx = true} : vector<8x1xf32> -> vector<8x1xf32>
    %75 = vector.broadcast %74 : vector<8x1xf32> to vector<8x8xf32>
    %76 = arith.mulf %71, %75 : vector<8x8xf32>
    %77 = arith.truncf %76 : vector<8x8xf32> to vector<8x8xbf16>
    %cst_25 = arith.constant dense<0.000000e+00> : vector<8x8xf32>
    %78 = tpu.matmul %77, %64, %cst_25 {dimension_numbers = #tpu.dot_dimension_numbers<[1], [0], [0], [1], [0, 0, 1, 1], [], []>} : vector<8x8xbf16>, vector<8x8xbf16>, vector<8x8xf32> -> vector<8x8xf32>
    %79 = vector.extract_strided_slice %44 {offsets = [0, 16], sizes = [8, 8], strides = [1, 1]} : vector<8x128xbf16> to vector<8x8xbf16>
    %80 = vector.extract_strided_slice %44 {offsets = [0, 48], sizes = [8, 8], strides = [1, 1]} : vector<8x128xbf16> to vector<8x8xbf16>
    %81 = vector.extract_strided_slice %44 {offsets = [0, 80], sizes = [8, 8], strides = [1, 1]} : vector<8x128xbf16> to vector<8x8xbf16>
    %cst_26 = arith.constant dense<0.000000e+00> : vector<8x8xf32>
    %82 = tpu.matmul %79, %80, %cst_26 {dimension_numbers = #tpu.dot_dimension_numbers<[1], [1], [0], [0], [0, 0, 1, 0], [], []>} : vector<8x8xbf16>, vector<8x8xbf16>, vector<8x8xf32> -> vector<8x8xf32>
    %83 = arith.addf %82, %5 : vector<8x8xf32>
    %cst_27 = arith.constant dense<0xFF800000> : vector<8xf32>
    %84 = vector.multi_reduction <maximumf>, %83, %cst_27 [1] : vector<8x8xf32> to vector<8xf32>
    %85 = vector.shape_cast %84 : vector<8xf32> to vector<8x1xf32>
    %86 = vector.broadcast %85 : vector<8x1xf32> to vector<8x8xf32>
    %87 = arith.subf %83, %86 : vector<8x8xf32>
    %88 = math.exp %87 : vector<8x8xf32>
    %cst_28 = arith.constant dense<0.000000e+00> : vector<8xf32>
    %89 = vector.multi_reduction <add>, %88, %cst_28 [1] : vector<8x8xf32> to vector<8xf32>
    %90 = vector.shape_cast %89 : vector<8xf32> to vector<8x1xf32>
    %91 = tpu.reciprocal %90 {approx = true} : vector<8x1xf32> -> vector<8x1xf32>
    %92 = vector.broadcast %91 : vector<8x1xf32> to vector<8x8xf32>
    %93 = arith.mulf %88, %92 : vector<8x8xf32>
    %94 = arith.truncf %93 : vector<8x8xf32> to vector<8x8xbf16>
    %cst_29 = arith.constant dense<0.000000e+00> : vector<8x8xf32>
    %95 = tpu.matmul %94, %81, %cst_29 {dimension_numbers = #tpu.dot_dimension_numbers<[1], [0], [0], [1], [0, 0, 1, 1], [], []>} : vector<8x8xbf16>, vector<8x8xbf16>, vector<8x8xf32> -> vector<8x8xf32>
    %96 = vector.extract_strided_slice %44 {offsets = [0, 24], sizes = [8, 8], strides = [1, 1]} : vector<8x128xbf16> to vector<8x8xbf16>
    %97 = vector.extract_strided_slice %44 {offsets = [0, 56], sizes = [8, 8], strides = [1, 1]} : vector<8x128xbf16> to vector<8x8xbf16>
    %98 = vector.extract_strided_slice %44 {offsets = [0, 88], sizes = [8, 8], strides = [1, 1]} : vector<8x128xbf16> to vector<8x8xbf16>
    %cst_30 = arith.constant dense<0.000000e+00> : vector<8x8xf32>
    %99 = tpu.matmul %96, %97, %cst_30 {dimension_numbers = #tpu.dot_dimension_numbers<[1], [1], [0], [0], [0, 0, 1, 0], [], []>} : vector<8x8xbf16>, vector<8x8xbf16>, vector<8x8xf32> -> vector<8x8xf32>
    %100 = arith.addf %99, %5 : vector<8x8xf32>
    %cst_31 = arith.constant dense<0xFF800000> : vector<8xf32>
    %101 = vector.multi_reduction <maximumf>, %100, %cst_31 [1] : vector<8x8xf32> to vector<8xf32>
    %102 = vector.shape_cast %101 : vector<8xf32> to vector<8x1xf32>
    %103 = vector.broadcast %102 : vector<8x1xf32> to vector<8x8xf32>
    %104 = arith.subf %100, %103 : vector<8x8xf32>
    %105 = math.exp %104 : vector<8x8xf32>
    %cst_32 = arith.constant dense<0.000000e+00> : vector<8xf32>
    %106 = vector.multi_reduction <add>, %105, %cst_32 [1] : vector<8x8xf32> to vector<8xf32>
    %107 = vector.shape_cast %106 : vector<8xf32> to vector<8x1xf32>
    %108 = tpu.reciprocal %107 {approx = true} : vector<8x1xf32> -> vector<8x1xf32>
    %109 = vector.broadcast %108 : vector<8x1xf32> to vector<8x8xf32>
    %110 = arith.mulf %105, %109 : vector<8x8xf32>
    %111 = arith.truncf %110 : vector<8x8xf32> to vector<8x8xbf16>
    %cst_33 = arith.constant dense<0.000000e+00> : vector<8x8xf32>
    %112 = tpu.matmul %111, %98, %cst_33 {dimension_numbers = #tpu.dot_dimension_numbers<[1], [0], [0], [1], [0, 0, 1, 1], [], []>} : vector<8x8xbf16>, vector<8x8xbf16>, vector<8x8xf32> -> vector<8x8xf32>
    %113 = tpu.concatenate %61, %78, %95, %112 in 1 : vector<8x8xf32>, vector<8x8xf32>, vector<8x8xf32>, vector<8x8xf32> -> vector<8x32xf32>
    %114 = arith.index_cast %c0_i32 : i32 to index
    %c0_34 = arith.constant 0 : index
    %c0_35 = arith.constant 0 : index
    %115 = vector.load %arg5[%114, %c0_34, %c0_35] : memref<2x32x32xbf16, #tpu.memory_space<vmem>>, vector<1x32x32xbf16>
    %116 = vector.shape_cast %115 : vector<1x32x32xbf16> to vector<32x32xbf16>
    %117 = arith.truncf %113 : vector<8x32xf32> to vector<8x32xbf16>
    %cst_36 = arith.constant dense<0.000000e+00> : vector<8x32xf32>
    %118 = tpu.matmul %117, %116, %cst_36 {dimension_numbers = #tpu.dot_dimension_numbers<[1], [0], [0], [1], [0, 0, 1, 1], [], []>} : vector<8x32xbf16>, vector<32x32xbf16>, vector<8x32xf32> -> vector<8x32xf32>
    %119 = arith.addf %1, %118 : vector<8x32xf32>
    %120 = arith.index_cast %c0_i32 : i32 to index
    %c0_37 = arith.constant 0 : index
    %c0_38 = arith.constant 0 : index
    %121 = vector.load %arg6[%120, %c0_37, %c0_38] : memref<2x1x32xf32, #tpu.memory_space<vmem>>, vector<1x1x32xf32>
    %122 = vector.shape_cast %121 : vector<1x1x32xf32> to vector<1x32xf32>
    %123 = vector.broadcast %122 : vector<1x32xf32> to vector<8x32xf32>
    %124 = arith.addf %119, %123 : vector<8x32xf32>
    %125 = arith.index_cast %c0_i32 : i32 to index
    %c0_39 = arith.constant 0 : index
    %c0_40 = arith.constant 0 : index
    %126 = vector.load %arg13[%125, %c0_39, %c0_40] : memref<2x1x32xf32, #tpu.memory_space<vmem>>, vector<1x1x32xf32>
    %127 = vector.shape_cast %126 : vector<1x1x32xf32> to vector<1x32xf32>
    %128 = arith.index_cast %c0_i32 : i32 to index
    %c0_41 = arith.constant 0 : index
    %c0_42 = arith.constant 0 : index
    %129 = vector.load %arg14[%128, %c0_41, %c0_42] : memref<2x1x32xf32, #tpu.memory_space<vmem>>, vector<1x1x32xf32>
    %130 = vector.shape_cast %129 : vector<1x1x32xf32> to vector<1x32xf32>
    %cst_43 = arith.constant dense<0.000000e+00> : vector<8xf32>
    %131 = vector.multi_reduction <add>, %124, %cst_43 [1] : vector<8x32xf32> to vector<8xf32>
    %132 = vector.shape_cast %131 : vector<8xf32> to vector<8x1xf32>
    %cst_44 = arith.constant 3.200000e+01 : f32
    %133 = vector.broadcast %cst_44 : f32 to vector<8x1xf32>
    %134 = arith.divf %132, %133 : vector<8x1xf32>
    %135 = vector.broadcast %134 : vector<8x1xf32> to vector<8x32xf32>
    %136 = arith.subf %124, %135 : vector<8x32xf32>
    %137 = arith.mulf %136, %136 : vector<8x32xf32>
    %cst_45 = arith.constant dense<0.000000e+00> : vector<8xf32>
    %138 = vector.multi_reduction <add>, %137, %cst_45 [1] : vector<8x32xf32> to vector<8xf32>
    %139 = vector.shape_cast %138 : vector<8xf32> to vector<8x1xf32>
    %cst_46 = arith.constant 3.100000e+01 : f32
    %140 = vector.broadcast %cst_46 : f32 to vector<8x1xf32>
    %141 = arith.divf %139, %140 : vector<8x1xf32>
    %142 = math.sqrt %141 : vector<8x1xf32>
    %143 = vector.broadcast %134 : vector<8x1xf32> to vector<8x32xf32>
    %144 = arith.subf %124, %143 : vector<8x32xf32>
    %145 = vector.broadcast %127 : vector<1x32xf32> to vector<8x32xf32>
    %146 = arith.mulf %145, %144 : vector<8x32xf32>
    %cst_47 = arith.constant 9.99999997E-7 : f32
    %147 = vector.broadcast %cst_47 : f32 to vector<8x1xf32>
    %148 = arith.addf %142, %147 : vector<8x1xf32>
    %149 = vector.broadcast %148 : vector<8x1xf32> to vector<8x32xf32>
    %150 = arith.divf %146, %149 : vector<8x32xf32>
    %151 = vector.broadcast %130 : vector<1x32xf32> to vector<8x32xf32>
    %152 = arith.addf %150, %151 : vector<8x32xf32>
    %153 = arith.index_cast %c0_i32 : i32 to index
    %c0_48 = arith.constant 0 : index
    %c0_49 = arith.constant 0 : index
    %154 = vector.load %arg7[%153, %c0_48, %c0_49] : memref<2x32x64xbf16, #tpu.memory_space<vmem>>, vector<1x32x64xbf16>
    %155 = vector.shape_cast %154 : vector<1x32x64xbf16> to vector<32x64xbf16>
    %156 = arith.truncf %152 : vector<8x32xf32> to vector<8x32xbf16>
    %cst_50 = arith.constant dense<0.000000e+00> : vector<8x64xf32>
    %157 = tpu.matmul %156, %155, %cst_50 {dimension_numbers = #tpu.dot_dimension_numbers<[1], [0], [0], [1], [0, 0, 1, 1], [], []>} : vector<8x32xbf16>, vector<32x64xbf16>, vector<8x64xf32> -> vector<8x64xf32>
    %158 = arith.index_cast %c0_i32 : i32 to index
    %c0_51 = arith.constant 0 : index
    %c0_52 = arith.constant 0 : index
    %159 = vector.load %arg8[%158, %c0_51, %c0_52] : memref<2x1x64xf32, #tpu.memory_space<vmem>>, vector<1x1x64xf32>
    %160 = vector.shape_cast %159 : vector<1x1x64xf32> to vector<1x64xf32>
    %161 = vector.broadcast %160 : vector<1x64xf32> to vector<8x64xf32>
    %162 = arith.addf %157, %161 : vector<8x64xf32>
    %cst_53 = arith.constant 0.000000e+00 : f32
    %163 = vector.broadcast %cst_53 : f32 to vector<8x64xf32>
    %164 = arith.maximumf %162, %163 : vector<8x64xf32>
    %165 = arith.index_cast %c0_i32 : i32 to index
    %c0_54 = arith.constant 0 : index
    %c0_55 = arith.constant 0 : index
    %166 = vector.load %arg9[%165, %c0_54, %c0_55] : memref<2x64x32xbf16, #tpu.memory_space<vmem>>, vector<1x64x32xbf16>
    %167 = vector.shape_cast %166 : vector<1x64x32xbf16> to vector<64x32xbf16>
    %168 = arith.truncf %164 : vector<8x64xf32> to vector<8x64xbf16>
    %cst_56 = arith.constant dense<0.000000e+00> : vector<8x32xf32>
    %169 = tpu.matmul %168, %167, %cst_56 {dimension_numbers = #tpu.dot_dimension_numbers<[1], [0], [0], [1], [0, 0, 1, 1], [], []>} : vector<8x64xbf16>, vector<64x32xbf16>, vector<8x32xf32> -> vector<8x32xf32>
    %170 = arith.addf %124, %169 : vector<8x32xf32>
    %171 = arith.index_cast %c0_i32 : i32 to index
    %c0_57 = arith.constant 0 : index
    %c0_58 = arith.constant 0 : index
    %172 = vector.load %arg10[%171, %c0_57, %c0_58] : memref<2x1x32xf32, #tpu.memory_space<vmem>>, vector<1x1x32xf32>
    %173 = vector.shape_cast %172 : vector<1x1x32xf32> to vector<1x32xf32>
    %174 = vector.broadcast %173 : vector<1x32xf32> to vector<8x32xf32>
    %175 = arith.addf %170, %174 : vector<8x32xf32>
    %c1_i32 = arith.constant 1 : i32
    %176 = arith.index_cast %c1_i32 : i32 to index
    %c0_59 = arith.constant 0 : index
    %c0_60 = arith.constant 0 : index
    %177 = vector.load %arg11[%176, %c0_59, %c0_60] : memref<2x1x32xf32, #tpu.memory_space<vmem>>, vector<1x1x32xf32>
    %178 = vector.shape_cast %177 : vector<1x1x32xf32> to vector<1x32xf32>
    %179 = arith.index_cast %c1_i32 : i32 to index
    %c0_61 = arith.constant 0 : index
    %c0_62 = arith.constant 0 : index
    %180 = vector.load %arg12[%179, %c0_61, %c0_62] : memref<2x1x32xf32, #tpu.memory_space<vmem>>, vector<1x1x32xf32>
    %181 = vector.shape_cast %180 : vector<1x1x32xf32> to vector<1x32xf32>
    %cst_63 = arith.constant dense<0.000000e+00> : vector<8xf32>
    %182 = vector.multi_reduction <add>, %175, %cst_63 [1] : vector<8x32xf32> to vector<8xf32>
    %183 = vector.shape_cast %182 : vector<8xf32> to vector<8x1xf32>
    %cst_64 = arith.constant 3.200000e+01 : f32
    %184 = vector.broadcast %cst_64 : f32 to vector<8x1xf32>
    %185 = arith.divf %183, %184 : vector<8x1xf32>
    %186 = vector.broadcast %185 : vector<8x1xf32> to vector<8x32xf32>
    %187 = arith.subf %175, %186 : vector<8x32xf32>
    %188 = arith.mulf %187, %187 : vector<8x32xf32>
    %cst_65 = arith.constant dense<0.000000e+00> : vector<8xf32>
    %189 = vector.multi_reduction <add>, %188, %cst_65 [1] : vector<8x32xf32> to vector<8xf32>
    %190 = vector.shape_cast %189 : vector<8xf32> to vector<8x1xf32>
    %cst_66 = arith.constant 3.100000e+01 : f32
    %191 = vector.broadcast %cst_66 : f32 to vector<8x1xf32>
    %192 = arith.divf %190, %191 : vector<8x1xf32>
    %193 = math.sqrt %192 : vector<8x1xf32>
    %194 = vector.broadcast %185 : vector<8x1xf32> to vector<8x32xf32>
    %195 = arith.subf %175, %194 : vector<8x32xf32>
    %196 = vector.broadcast %178 : vector<1x32xf32> to vector<8x32xf32>
    %197 = arith.mulf %196, %195 : vector<8x32xf32>
    %cst_67 = arith.constant 9.99999997E-7 : f32
    %198 = vector.broadcast %cst_67 : f32 to vector<8x1xf32>
    %199 = arith.addf %193, %198 : vector<8x1xf32>
    %200 = vector.broadcast %199 : vector<8x1xf32> to vector<8x32xf32>
    %201 = arith.divf %197, %200 : vector<8x32xf32>
    %202 = vector.broadcast %181 : vector<1x32xf32> to vector<8x32xf32>
    %203 = arith.addf %201, %202 : vector<8x32xf32>
    %204 = arith.index_cast %c1_i32 : i32 to index
    %c0_68 = arith.constant 0 : index
    %c0_69 = arith.constant 0 : index
    %205 = vector.load %arg3[%204, %c0_68, %c0_69] : memref<2x32x128xbf16, #tpu.memory_space<vmem>>, vector<1x32x128xbf16>
    %206 = vector.shape_cast %205 : vector<1x32x128xbf16> to vector<32x128xbf16>
    %207 = arith.truncf %203 : vector<8x32xf32> to vector<8x32xbf16>
    %cst_70 = arith.constant dense<0.000000e+00> : vector<8x128xf32>
    %208 = tpu.matmul %207, %206, %cst_70 {dimension_numbers = #tpu.dot_dimension_numbers<[1], [0], [0], [1], [0, 0, 1, 1], [], []>} : vector<8x32xbf16>, vector<32x128xbf16>, vector<8x128xf32> -> vector<8x128xf32>
    %209 = arith.index_cast %c1_i32 : i32 to index
    %c0_71 = arith.constant 0 : index
    %c0_72 = arith.constant 0 : index
    %210 = vector.load %arg4[%209, %c0_71, %c0_72] : memref<2x1x128xf32, #tpu.memory_space<vmem>>, vector<1x1x128xf32>
    %211 = vector.shape_cast %210 : vector<1x1x128xf32> to vector<1x128xf32>
    %212 = vector.broadcast %211 : vector<1x128xf32> to vector<8x128xf32>
    %213 = arith.addf %208, %212 : vector<8x128xf32>
    %214 = arith.truncf %213 : vector<8x128xf32> to vector<8x128xbf16>
    %215 = vector.extract_strided_slice %214 {offsets = [0, 0], sizes = [8, 8], strides = [1, 1]} : vector<8x128xbf16> to vector<8x8xbf16>
    %216 = vector.extract_strided_slice %214 {offsets = [0, 32], sizes = [8, 8], strides = [1, 1]} : vector<8x128xbf16> to vector<8x8xbf16>
    %217 = vector.extract_strided_slice %214 {offsets = [0, 64], sizes = [8, 8], strides = [1, 1]} : vector<8x128xbf16> to vector<8x8xbf16>
    %cst_73 = arith.constant dense<0.000000e+00> : vector<8x8xf32>
    %218 = tpu.matmul %215, %216, %cst_73 {dimension_numbers = #tpu.dot_dimension_numbers<[1], [1], [0], [0], [0, 0, 1, 0], [], []>} : vector<8x8xbf16>, vector<8x8xbf16>, vector<8x8xf32> -> vector<8x8xf32>
    %219 = arith.addf %218, %5 : vector<8x8xf32>
    %cst_74 = arith.constant dense<0xFF800000> : vector<8xf32>
    %220 = vector.multi_reduction <maximumf>, %219, %cst_74 [1] : vector<8x8xf32> to vector<8xf32>
    %221 = vector.shape_cast %220 : vector<8xf32> to vector<8x1xf32>
    %222 = vector.broadcast %221 : vector<8x1xf32> to vector<8x8xf32>
    %223 = arith.subf %219, %222 : vector<8x8xf32>
    %224 = math.exp %223 : vector<8x8xf32>
    %cst_75 = arith.constant dense<0.000000e+00> : vector<8xf32>
    %225 = vector.multi_reduction <add>, %224, %cst_75 [1] : vector<8x8xf32> to vector<8xf32>
    %226 = vector.shape_cast %225 : vector<8xf32> to vector<8x1xf32>
    %227 = tpu.reciprocal %226 {approx = true} : vector<8x1xf32> -> vector<8x1xf32>
    %228 = vector.broadcast %227 : vector<8x1xf32> to vector<8x8xf32>
    %229 = arith.mulf %224, %228 : vector<8x8xf32>
    %230 = arith.truncf %229 : vector<8x8xf32> to vector<8x8xbf16>
    %cst_76 = arith.constant dense<0.000000e+00> : vector<8x8xf32>
    %231 = tpu.matmul %230, %217, %cst_76 {dimension_numbers = #tpu.dot_dimension_numbers<[1], [0], [0], [1], [0, 0, 1, 1], [], []>} : vector<8x8xbf16>, vector<8x8xbf16>, vector<8x8xf32> -> vector<8x8xf32>
    %232 = vector.extract_strided_slice %214 {offsets = [0, 8], sizes = [8, 8], strides = [1, 1]} : vector<8x128xbf16> to vector<8x8xbf16>
    %233 = vector.extract_strided_slice %214 {offsets = [0, 40], sizes = [8, 8], strides = [1, 1]} : vector<8x128xbf16> to vector<8x8xbf16>
    %234 = vector.extract_strided_slice %214 {offsets = [0, 72], sizes = [8, 8], strides = [1, 1]} : vector<8x128xbf16> to vector<8x8xbf16>
    %cst_77 = arith.constant dense<0.000000e+00> : vector<8x8xf32>
    %235 = tpu.matmul %232, %233, %cst_77 {dimension_numbers = #tpu.dot_dimension_numbers<[1], [1], [0], [0], [0, 0, 1, 0], [], []>} : vector<8x8xbf16>, vector<8x8xbf16>, vector<8x8xf32> -> vector<8x8xf32>
    %236 = arith.addf %235, %5 : vector<8x8xf32>
    %cst_78 = arith.constant dense<0xFF800000> : vector<8xf32>
    %237 = vector.multi_reduction <maximumf>, %236, %cst_78 [1] : vector<8x8xf32> to vector<8xf32>
    %238 = vector.shape_cast %237 : vector<8xf32> to vector<8x1xf32>
    %239 = vector.broadcast %238 : vector<8x1xf32> to vector<8x8xf32>
    %240 = arith.subf %236, %239 : vector<8x8xf32>
    %241 = math.exp %240 : vector<8x8xf32>
    %cst_79 = arith.constant dense<0.000000e+00> : vector<8xf32>
    %242 = vector.multi_reduction <add>, %241, %cst_79 [1] : vector<8x8xf32> to vector<8xf32>
    %243 = vector.shape_cast %242 : vector<8xf32> to vector<8x1xf32>
    %244 = tpu.reciprocal %243 {approx = true} : vector<8x1xf32> -> vector<8x1xf32>
    %245 = vector.broadcast %244 : vector<8x1xf32> to vector<8x8xf32>
    %246 = arith.mulf %241, %245 : vector<8x8xf32>
    %247 = arith.truncf %246 : vector<8x8xf32> to vector<8x8xbf16>
    %cst_80 = arith.constant dense<0.000000e+00> : vector<8x8xf32>
    %248 = tpu.matmul %247, %234, %cst_80 {dimension_numbers = #tpu.dot_dimension_numbers<[1], [0], [0], [1], [0, 0, 1, 1], [], []>} : vector<8x8xbf16>, vector<8x8xbf16>, vector<8x8xf32> -> vector<8x8xf32>
    %249 = vector.extract_strided_slice %214 {offsets = [0, 16], sizes = [8, 8], strides = [1, 1]} : vector<8x128xbf16> to vector<8x8xbf16>
    %250 = vector.extract_strided_slice %214 {offsets = [0, 48], sizes = [8, 8], strides = [1, 1]} : vector<8x128xbf16> to vector<8x8xbf16>
    %251 = vector.extract_strided_slice %214 {offsets = [0, 80], sizes = [8, 8], strides = [1, 1]} : vector<8x128xbf16> to vector<8x8xbf16>
    %cst_81 = arith.constant dense<0.000000e+00> : vector<8x8xf32>
    %252 = tpu.matmul %249, %250, %cst_81 {dimension_numbers = #tpu.dot_dimension_numbers<[1], [1], [0], [0], [0, 0, 1, 0], [], []>} : vector<8x8xbf16>, vector<8x8xbf16>, vector<8x8xf32> -> vector<8x8xf32>
    %253 = arith.addf %252, %5 : vector<8x8xf32>
    %cst_82 = arith.constant dense<0xFF800000> : vector<8xf32>
    %254 = vector.multi_reduction <maximumf>, %253, %cst_82 [1] : vector<8x8xf32> to vector<8xf32>
    %255 = vector.shape_cast %254 : vector<8xf32> to vector<8x1xf32>
    %256 = vector.broadcast %255 : vector<8x1xf32> to vector<8x8xf32>
    %257 = arith.subf %253, %256 : vector<8x8xf32>
    %258 = math.exp %257 : vector<8x8xf32>
    %cst_83 = arith.constant dense<0.000000e+00> : vector<8xf32>
    %259 = vector.multi_reduction <add>, %258, %cst_83 [1] : vector<8x8xf32> to vector<8xf32>
    %260 = vector.shape_cast %259 : vector<8xf32> to vector<8x1xf32>
    %261 = tpu.reciprocal %260 {approx = true} : vector<8x1xf32> -> vector<8x1xf32>
    %262 = vector.broadcast %261 : vector<8x1xf32> to vector<8x8xf32>
    %263 = arith.mulf %258, %262 : vector<8x8xf32>
    %264 = arith.truncf %263 : vector<8x8xf32> to vector<8x8xbf16>
    %cst_84 = arith.constant dense<0.000000e+00> : vector<8x8xf32>
    %265 = tpu.matmul %264, %251, %cst_84 {dimension_numbers = #tpu.dot_dimension_numbers<[1], [0], [0], [1], [0, 0, 1, 1], [], []>} : vector<8x8xbf16>, vector<8x8xbf16>, vector<8x8xf32> -> vector<8x8xf32>
    %266 = vector.extract_strided_slice %214 {offsets = [0, 24], sizes = [8, 8], strides = [1, 1]} : vector<8x128xbf16> to vector<8x8xbf16>
    %267 = vector.extract_strided_slice %214 {offsets = [0, 56], sizes = [8, 8], strides = [1, 1]} : vector<8x128xbf16> to vector<8x8xbf16>
    %268 = vector.extract_strided_slice %214 {offsets = [0, 88], sizes = [8, 8], strides = [1, 1]} : vector<8x128xbf16> to vector<8x8xbf16>
    %cst_85 = arith.constant dense<0.000000e+00> : vector<8x8xf32>
    %269 = tpu.matmul %266, %267, %cst_85 {dimension_numbers = #tpu.dot_dimension_numbers<[1], [1], [0], [0], [0, 0, 1, 0], [], []>} : vector<8x8xbf16>, vector<8x8xbf16>, vector<8x8xf32> -> vector<8x8xf32>
    %270 = arith.addf %269, %5 : vector<8x8xf32>
    %cst_86 = arith.constant dense<0xFF800000> : vector<8xf32>
    %271 = vector.multi_reduction <maximumf>, %270, %cst_86 [1] : vector<8x8xf32> to vector<8xf32>
    %272 = vector.shape_cast %271 : vector<8xf32> to vector<8x1xf32>
    %273 = vector.broadcast %272 : vector<8x1xf32> to vector<8x8xf32>
    %274 = arith.subf %270, %273 : vector<8x8xf32>
    %275 = math.exp %274 : vector<8x8xf32>
    %cst_87 = arith.constant dense<0.000000e+00> : vector<8xf32>
    %276 = vector.multi_reduction <add>, %275, %cst_87 [1] : vector<8x8xf32> to vector<8xf32>
    %277 = vector.shape_cast %276 : vector<8xf32> to vector<8x1xf32>
    %278 = tpu.reciprocal %277 {approx = true} : vector<8x1xf32> -> vector<8x1xf32>
    %279 = vector.broadcast %278 : vector<8x1xf32> to vector<8x8xf32>
    %280 = arith.mulf %275, %279 : vector<8x8xf32>
    %281 = arith.truncf %280 : vector<8x8xf32> to vector<8x8xbf16>
    %cst_88 = arith.constant dense<0.000000e+00> : vector<8x8xf32>
    %282 = tpu.matmul %281, %268, %cst_88 {dimension_numbers = #tpu.dot_dimension_numbers<[1], [0], [0], [1], [0, 0, 1, 1], [], []>} : vector<8x8xbf16>, vector<8x8xbf16>, vector<8x8xf32> -> vector<8x8xf32>
    %283 = tpu.concatenate %231, %248, %265, %282 in 1 : vector<8x8xf32>, vector<8x8xf32>, vector<8x8xf32>, vector<8x8xf32> -> vector<8x32xf32>
    %284 = arith.index_cast %c1_i32 : i32 to index
    %c0_89 = arith.constant 0 : index
    %c0_90 = arith.constant 0 : index
    %285 = vector.load %arg5[%284, %c0_89, %c0_90] : memref<2x32x32xbf16, #tpu.memory_space<vmem>>, vector<1x32x32xbf16>
    %286 = vector.shape_cast %285 : vector<1x32x32xbf16> to vector<32x32xbf16>
    %287 = arith.truncf %283 : vector<8x32xf32> to vector<8x32xbf16>
    %cst_91 = arith.constant dense<0.000000e+00> : vector<8x32xf32>
    %288 = tpu.matmul %287, %286, %cst_91 {dimension_numbers = #tpu.dot_dimension_numbers<[1], [0], [0], [1], [0, 0, 1, 1], [], []>} : vector<8x32xbf16>, vector<32x32xbf16>, vector<8x32xf32> -> vector<8x32xf32>
    %289 = arith.addf %175, %288 : vector<8x32xf32>
    %290 = arith.index_cast %c1_i32 : i32 to index
    %c0_92 = arith.constant 0 : index
    %c0_93 = arith.constant 0 : index
    %291 = vector.load %arg6[%290, %c0_92, %c0_93] : memref<2x1x32xf32, #tpu.memory_space<vmem>>, vector<1x1x32xf32>
    %292 = vector.shape_cast %291 : vector<1x1x32xf32> to vector<1x32xf32>
    %293 = vector.broadcast %292 : vector<1x32xf32> to vector<8x32xf32>
    %294 = arith.addf %289, %293 : vector<8x32xf32>
    %295 = arith.index_cast %c1_i32 : i32 to index
    %c0_94 = arith.constant 0 : index
    %c0_95 = arith.constant 0 : index
    %296 = vector.load %arg13[%295, %c0_94, %c0_95] : memref<2x1x32xf32, #tpu.memory_space<vmem>>, vector<1x1x32xf32>
    %297 = vector.shape_cast %296 : vector<1x1x32xf32> to vector<1x32xf32>
    %298 = arith.index_cast %c1_i32 : i32 to index
    %c0_96 = arith.constant 0 : index
    %c0_97 = arith.constant 0 : index
    %299 = vector.load %arg14[%298, %c0_96, %c0_97] : memref<2x1x32xf32, #tpu.memory_space<vmem>>, vector<1x1x32xf32>
    %300 = vector.shape_cast %299 : vector<1x1x32xf32> to vector<1x32xf32>
    %cst_98 = arith.constant dense<0.000000e+00> : vector<8xf32>
    %301 = vector.multi_reduction <add>, %294, %cst_98 [1] : vector<8x32xf32> to vector<8xf32>
    %302 = vector.shape_cast %301 : vector<8xf32> to vector<8x1xf32>
    %cst_99 = arith.constant 3.200000e+01 : f32
    %303 = vector.broadcast %cst_99 : f32 to vector<8x1xf32>
    %304 = arith.divf %302, %303 : vector<8x1xf32>
    %305 = vector.broadcast %304 : vector<8x1xf32> to vector<8x32xf32>
    %306 = arith.subf %294, %305 : vector<8x32xf32>
    %307 = arith.mulf %306, %306 : vector<8x32xf32>
    %cst_100 = arith.constant dense<0.000000e+00> : vector<8xf32>
    %308 = vector.multi_reduction <add>, %307, %cst_100 [1] : vector<8x32xf32> to vector<8xf32>
    %309 = vector.shape_cast %308 : vector<8xf32> to vector<8x1xf32>
    %cst_101 = arith.constant 3.100000e+01 : f32
    %310 = vector.broadcast %cst_101 : f32 to vector<8x1xf32>
    %311 = arith.divf %309, %310 : vector<8x1xf32>
    %312 = math.sqrt %311 : vector<8x1xf32>
    %313 = vector.broadcast %304 : vector<8x1xf32> to vector<8x32xf32>
    %314 = arith.subf %294, %313 : vector<8x32xf32>
    %315 = vector.broadcast %297 : vector<1x32xf32> to vector<8x32xf32>
    %316 = arith.mulf %315, %314 : vector<8x32xf32>
    %cst_102 = arith.constant 9.99999997E-7 : f32
    %317 = vector.broadcast %cst_102 : f32 to vector<8x1xf32>
    %318 = arith.addf %312, %317 : vector<8x1xf32>
    %319 = vector.broadcast %318 : vector<8x1xf32> to vector<8x32xf32>
    %320 = arith.divf %316, %319 : vector<8x32xf32>
    %321 = vector.broadcast %300 : vector<1x32xf32> to vector<8x32xf32>
    %322 = arith.addf %320, %321 : vector<8x32xf32>
    %323 = arith.index_cast %c1_i32 : i32 to index
    %c0_103 = arith.constant 0 : index
    %c0_104 = arith.constant 0 : index
    %324 = vector.load %arg7[%323, %c0_103, %c0_104] : memref<2x32x64xbf16, #tpu.memory_space<vmem>>, vector<1x32x64xbf16>
    %325 = vector.shape_cast %324 : vector<1x32x64xbf16> to vector<32x64xbf16>
    %326 = arith.truncf %322 : vector<8x32xf32> to vector<8x32xbf16>
    %cst_105 = arith.constant dense<0.000000e+00> : vector<8x64xf32>
    %327 = tpu.matmul %326, %325, %cst_105 {dimension_numbers = #tpu.dot_dimension_numbers<[1], [0], [0], [1], [0, 0, 1, 1], [], []>} : vector<8x32xbf16>, vector<32x64xbf16>, vector<8x64xf32> -> vector<8x64xf32>
    %328 = arith.index_cast %c1_i32 : i32 to index
    %c0_106 = arith.constant 0 : index
    %c0_107 = arith.constant 0 : index
    %329 = vector.load %arg8[%328, %c0_106, %c0_107] : memref<2x1x64xf32, #tpu.memory_space<vmem>>, vector<1x1x64xf32>
    %330 = vector.shape_cast %329 : vector<1x1x64xf32> to vector<1x64xf32>
    %331 = vector.broadcast %330 : vector<1x64xf32> to vector<8x64xf32>
    %332 = arith.addf %327, %331 : vector<8x64xf32>
    %cst_108 = arith.constant 0.000000e+00 : f32
    %333 = vector.broadcast %cst_108 : f32 to vector<8x64xf32>
    %334 = arith.maximumf %332, %333 : vector<8x64xf32>
    %335 = arith.index_cast %c1_i32 : i32 to index
    %c0_109 = arith.constant 0 : index
    %c0_110 = arith.constant 0 : index
    %336 = vector.load %arg9[%335, %c0_109, %c0_110] : memref<2x64x32xbf16, #tpu.memory_space<vmem>>, vector<1x64x32xbf16>
    %337 = vector.shape_cast %336 : vector<1x64x32xbf16> to vector<64x32xbf16>
    %338 = arith.truncf %334 : vector<8x64xf32> to vector<8x64xbf16>
    %cst_111 = arith.constant dense<0.000000e+00> : vector<8x32xf32>
    %339 = tpu.matmul %338, %337, %cst_111 {dimension_numbers = #tpu.dot_dimension_numbers<[1], [0], [0], [1], [0, 0, 1, 1], [], []>} : vector<8x64xbf16>, vector<64x32xbf16>, vector<8x32xf32> -> vector<8x32xf32>
    %340 = arith.addf %294, %339 : vector<8x32xf32>
    %341 = arith.index_cast %c1_i32 : i32 to index
    %c0_112 = arith.constant 0 : index
    %c0_113 = arith.constant 0 : index
    %342 = vector.load %arg10[%341, %c0_112, %c0_113] : memref<2x1x32xf32, #tpu.memory_space<vmem>>, vector<1x1x32xf32>
    %343 = vector.shape_cast %342 : vector<1x1x32xf32> to vector<1x32xf32>
    %344 = vector.broadcast %343 : vector<1x32xf32> to vector<8x32xf32>
    %345 = arith.addf %340, %344 : vector<8x32xf32>
    %c2_i32 = arith.constant 2 : i32
    %346 = vector.extract_strided_slice %345 {offsets = [0, 0], sizes = [1, 32], strides = [1, 1]} : vector<8x32xf32> to vector<1x32xf32>
    %c0_114 = arith.constant 0 : index
    %c0_115 = arith.constant 0 : index
    %347 = vector.load %arg15[%c0_114, %c0_115] : memref<1x32xf32, #tpu.memory_space<vmem>>, vector<1x32xf32>
    %c0_116 = arith.constant 0 : index
    %c0_117 = arith.constant 0 : index
    %348 = vector.load %arg16[%c0_116, %c0_117] : memref<1x32xf32, #tpu.memory_space<vmem>>, vector<1x32xf32>
    %cst_118 = arith.constant dense<0.000000e+00> : vector<1xf32>
    %349 = vector.multi_reduction <add>, %346, %cst_118 [1] : vector<1x32xf32> to vector<1xf32>
    %350 = vector.shape_cast %349 : vector<1xf32> to vector<1x1xf32>
    %cst_119 = arith.constant 3.200000e+01 : f32
    %351 = vector.broadcast %cst_119 : f32 to vector<1x1xf32>
    %352 = arith.divf %350, %351 : vector<1x1xf32>
    %353 = vector.broadcast %352 : vector<1x1xf32> to vector<1x32xf32>
    %354 = arith.subf %346, %353 : vector<1x32xf32>
    %355 = arith.mulf %354, %354 : vector<1x32xf32>
    %cst_120 = arith.constant dense<0.000000e+00> : vector<1xf32>
    %356 = vector.multi_reduction <add>, %355, %cst_120 [1] : vector<1x32xf32> to vector<1xf32>
    %357 = vector.shape_cast %356 : vector<1xf32> to vector<1x1xf32>
    %cst_121 = arith.constant 3.100000e+01 : f32
    %358 = vector.broadcast %cst_121 : f32 to vector<1x1xf32>
    %359 = arith.divf %357, %358 : vector<1x1xf32>
    %360 = math.sqrt %359 : vector<1x1xf32>
    %361 = vector.broadcast %352 : vector<1x1xf32> to vector<1x32xf32>
    %362 = arith.subf %346, %361 : vector<1x32xf32>
    %363 = arith.mulf %347, %362 : vector<1x32xf32>
    %cst_122 = arith.constant 9.99999997E-7 : f32
    %364 = vector.broadcast %cst_122 : f32 to vector<1x1xf32>
    %365 = arith.addf %360, %364 : vector<1x1xf32>
    %366 = vector.broadcast %365 : vector<1x1xf32> to vector<1x32xf32>
    %367 = arith.divf %363, %366 : vector<1x32xf32>
    %368 = arith.addf %367, %348 : vector<1x32xf32>
    %c0_123 = arith.constant 0 : index
    %c0_124 = arith.constant 0 : index
    %369 = vector.load %arg17[%c0_123, %c0_124] : memref<32x128xbf16, #tpu.memory_space<vmem>>, vector<32x128xbf16>
    %370 = arith.truncf %368 : vector<1x32xf32> to vector<1x32xbf16>
    %cst_125 = arith.constant dense<0.000000e+00> : vector<1x128xf32>
    %371 = tpu.matmul %370, %369, %cst_125 {dimension_numbers = #tpu.dot_dimension_numbers<[1], [0], [0], [1], [0, 0, 1, 1], [], []>} : vector<1x32xbf16>, vector<32x128xbf16>, vector<1x128xf32> -> vector<1x128xf32>
    %c0_126 = arith.constant 0 : index
    %c0_127 = arith.constant 0 : index
    %372 = vector.load %arg18[%c0_126, %c0_127] : memref<1x128xf32, #tpu.memory_space<vmem>>, vector<1x128xf32>
    %373 = arith.addf %371, %372 : vector<1x128xf32>
    %cst_128 = arith.constant dense<0xFF800000> : vector<1xf32>
    %374 = vector.multi_reduction <maximumf>, %373, %cst_128 [1] : vector<1x128xf32> to vector<1xf32>
    %375 = vector.shape_cast %374 : vector<1xf32> to vector<1x1xf32>
    %376 = vector.broadcast %375 : vector<1x1xf32> to vector<1x128xf32>
    %377 = arith.subf %373, %376 : vector<1x128xf32>
    %378 = math.exp %377 : vector<1x128xf32>
    %cst_129 = arith.constant dense<0.000000e+00> : vector<1xf32>
    %379 = vector.multi_reduction <add>, %378, %cst_129 [1] : vector<1x128xf32> to vector<1xf32>
    %380 = vector.shape_cast %379 : vector<1xf32> to vector<1x1xf32>
    %381 = math.log %380 : vector<1x1xf32>
    %382 = vector.broadcast %381 : vector<1x1xf32> to vector<1x128xf32>
    %383 = arith.subf %377, %382 : vector<1x128xf32>
    %384 = vector.shape_cast %383 : vector<1x128xf32> to vector<1x1x128xf32>
    %c0_130 = arith.constant 0 : index
    %c0_131 = arith.constant 0 : index
    %c0_132 = arith.constant 0 : index
    %385 = vector.load %arg19[%c0_130, %c0_131, %c0_132] : memref<1x1x128xf32, #tpu.memory_space<vmem>>, vector<1x1x128xf32>
    tpu.vector_store %arg19[%c0_130, %c0_131, %c0_132], %384 {strides = array<i32>} : memref<1x1x128xf32, #tpu.memory_space<vmem>>, vector<1x1x128xf32>,
    return
  }
  func.func @transform_0(%arg0: i32) -> (i32, i32, i32) {
    %c0_i32 = arith.constant 0 : i32
    %c0_i32_0 = arith.constant 0 : i32
    %c0_i32_1 = arith.constant 0 : i32
    return %arg0, %c0_i32, %c0_i32_0 : i32, i32, i32
  }
  func.func @transform_1(%arg0: i32) -> (i32, i32, i32) {
    %c0_i32 = arith.constant 0 : i32
    %c0_i32_0 = arith.constant 0 : i32
    %c0_i32_1 = arith.constant 0 : i32
    return %arg0, %c0_i32, %c0_i32_0 : i32, i32, i32
  }
  func.func @transform_2(%arg0: i32) -> (i32, i32, i32) {
    %c0_i32 = arith.constant 0 : i32
    %c0_i32_0 = arith.constant 0 : i32
    %c0_i32_1 = arith.constant 0 : i32
    %c0_i32_2 = arith.constant 0 : i32
    return %c0_i32, %c0_i32_0, %c0_i32_1 : i32, i32, i32
  }
  func.func @transform_3(%arg0: i32) -> (i32, i32, i32) {
    %c0_i32 = arith.constant 0 : i32
    %c0_i32_0 = arith.constant 0 : i32
    %c0_i32_1 = arith.constant 0 : i32
    %c0_i32_2 = arith.constant 0 : i32
    return %c0_i32, %c0_i32_0, %c0_i32_1 : i32, i32, i32
  }
  func.func @transform_4(%arg0: i32) -> (i32, i32, i32) {
    %c0_i32 = arith.constant 0 : i32
    %c0_i32_0 = arith.constant 0 : i32
    %c0_i32_1 = arith.constant 0 : i32
    %c0_i32_2 = arith.constant 0 : i32
    return %c0_i32, %c0_i32_0, %c0_i32_1 : i32, i32, i32
  }
  func.func @transform_5(%arg0: i32) -> (i32, i32, i32) {
    %c0_i32 = arith.constant 0 : i32
    %c0_i32_0 = arith.constant 0 : i32
    %c0_i32_1 = arith.constant 0 : i32
    %c0_i32_2 = arith.constant 0 : i32
    return %c0_i32, %c0_i32_0, %c0_i32_1 : i32, i32, i32
  }
  func.func @transform_6(%arg0: i32) -> (i32, i32, i32) {
    %c0_i32 = arith.constant 0 : i32
    %c0_i32_0 = arith.constant 0 : i32
    %c0_i32_1 = arith.constant 0 : i32
    %c0_i32_2 = arith.constant 0 : i32
    return %c0_i32, %c0_i32_0, %c0_i32_1 : i32, i32, i32
  }
  func.func @transform_7(%arg0: i32) -> (i32, i32, i32) {
    %c0_i32 = arith.constant 0 : i32
    %c0_i32_0 = arith.constant 0 : i32
    %c0_i32_1 = arith.constant 0 : i32
    %c0_i32_2 = arith.constant 0 : i32
    return %c0_i32, %c0_i32_0, %c0_i32_1 : i32, i32, i32
  }
  func.func @transform_8(%arg0: i32) -> (i32, i32, i32) {
    %c0_i32 = arith.constant 0 : i32
    %c0_i32_0 = arith.constant 0 : i32
    %c0_i32_1 = arith.constant 0 : i32
    %c0_i32_2 = arith.constant 0 : i32
    return %c0_i32, %c0_i32_0, %c0_i32_1 : i32, i32, i32
  }
  func.func @transform_9(%arg0: i32) -> (i32, i32, i32) {
    %c0_i32 = arith.constant 0 : i32
    %c0_i32_0 = arith.constant 0 : i32
    %c0_i32_1 = arith.constant 0 : i32
    %c0_i32_2 = arith.constant 0 : i32
    return %c0_i32, %c0_i32_0, %c0_i32_1 : i32, i32, i32
  }
  func.func @transform_10(%arg0: i32) -> (i32, i32, i32) {
    %c0_i32 = arith.constant 0 : i32
    %c0_i32_0 = arith.constant 0 : i32
    %c0_i32_1 = arith.constant 0 : i32
    %c0_i32_2 = arith.constant 0 : i32
    return %c0_i32, %c0_i32_0, %c0_i32_1 : i32, i32, i32
  }
  func.func @transform_11(%arg0: i32) -> (i32, i32, i32) {
    %c0_i32 = arith.constant 0 : i32
    %c0_i32_0 = arith.constant 0 : i32
    %c0_i32_1 = arith.constant 0 : i32
    %c0_i32_2 = arith.constant 0 : i32
    return %c0_i32, %c0_i32_0, %c0_i32_1 : i32, i32, i32
  }
  func.func @transform_12(%arg0: i32) -> (i32, i32, i32) {
    %c0_i32 = arith.constant 0 : i32
    %c0_i32_0 = arith.constant 0 : i32
    %c0_i32_1 = arith.constant 0 : i32
    %c0_i32_2 = arith.constant 0 : i32
    return %c0_i32, %c0_i32_0, %c0_i32_1 : i32, i32, i32
  }
  func.func @transform_13(%arg0: i32) -> (i32, i32, i32) {
    %c0_i32 = arith.constant 0 : i32
    %c0_i32_0 = arith.constant 0 : i32
    %c0_i32_1 = arith.constant 0 : i32
    %c0_i32_2 = arith.constant 0 : i32
    return %c0_i32, %c0_i32_0, %c0_i32_1 : i32, i32, i32
  }
  func.func @transform_14(%arg0: i32) -> (i32, i32) {
    %c0_i32 = arith.constant 0 : i32
    %c0_i32_0 = arith.constant 0 : i32
    %c0_i32_1 = arith.constant 0 : i32
    return %c0_i32, %c0_i32_0 : i32, i32
  }
  func.func @transform_15(%arg0: i32) -> (i32, i32) {
    %c0_i32 = arith.constant 0 : i32
    %c0_i32_0 = arith.constant 0 : i32
    %c0_i32_1 = arith.constant 0 : i32
    return %c0_i32, %c0_i32_0 : i32, i32
  }
  func.func @transform_16(%arg0: i32) -> (i32, i32) {
    %c0_i32 = arith.constant 0 : i32
    %c0_i32_0 = arith.constant 0 : i32
    %c0_i32_1 = arith.constant 0 : i32
    return %c0_i32, %c0_i32_0 : i32, i32
  }
  func.func @transform_17(%arg0: i32) -> (i32, i32) {
    %c0_i32 = arith.constant 0 : i32
    %c0_i32_0 = arith.constant 0 : i32
    %c0_i32_1 = arith.constant 0 : i32
    return %c0_i32, %c0_i32_0 : i32, i32
  }
  func.func @transform_18(%arg0: i32) -> (i32, i32, i32) {
    %c0_i32 = arith.constant 0 : i32
    %c0_i32_0 = arith.constant 0 : i32
    %c0_i32_1 = arith.constant 0 : i32
    return %arg0, %c0_i32, %c0_i32_0 : i32, i32, i32
  }
}

</mosaic_0001>

<bundles_post_ra>
// kernel: tpu_custom_call.1
= control target key start
LH: loop header
LB: loop body
LE: loop exit
PB: predicated region body
PF: predicated region fallthrough
CT: control target
= control target key end

     0   :  { %s3191_s0 = inlined_call_operand.hbm [shape: f32[2,8,32], index: 0, kind: input, shape index: {}]   ;;  %s3192_s1 = inlined_call_operand.hbm [shape: f32[2,1,8], index: 1, kind: input, shape index: {}]   ;;  %s3193_s2 = inlined_call_operand.vmem [shape: bf16[2,32,128], index: 2, kind: input, shape index: {}]   ;;  %s3194_s3 = inlined_call_operand.hbm [shape: f32[2,1,128], index: 3, kind: input, shape index: {}]   ;;  %s3195_s4 = inlined_call_operand.vmem [shape: bf16[2,32,32], index: 4, kind: input, shape index: {}]   ;;  %s3196_s5 = inlined_call_operand.vmem [shape: f32[2,1,32], index: 5, kind: input, shape index: {}]   ;;  %s3197_s6 = inlined_call_operand.vmem [shape: bf16[2,32,64], index: 6, kind: input, shape index: {}]   ;;  %s3198_s7 = inlined_call_operand.vmem [shape: f32[2,1,64], index: 7, kind: input, shape index: {}]   ;;  %s3199_s8 = inlined_call_operand.vmem [shape: bf16[2,64,32], index: 8, kind: input, shape index: {}]   ;;  %s3200_s9 = inlined_call_operand.vmem [shape: f32[2,1,32], index: 9, kind: input, shape index: {}]   ;;  %s3201_s10 = inlined_call_operand.vmem [shape: f32[2,1,32], index: 10, kind: input, shape index: {}]   ;;  %s3202_s11 = inlined_call_operand.hbm [shape: f32[2,1,32], index: 11, kind: input, shape index: {}]   ;;  %s3203_s12 = inlined_call_operand.vmem [shape: f32[2,1,32], index: 12, kind: input, shape index: {}]   ;;  %s3204_s13 = inlined_call_operand.hbm [shape: f32[2,1,32], index: 13, kind: input, shape index: {}]   ;;  %s3205_s14 = inlined_call_operand.vmem [shape: f32[1,32], index: 14, kind: input, shape index: {}]   ;;  %s3206_s15 = inlined_call_operand.vmem [shape: f32[1,32], index: 15, kind: input, shape index: {}]   ;;  %s3207_s16 = inlined_call_operand.hbm [shape: bf16[32,128], index: 16, kind: input, shape index: {}]   ;;  %s3208_s17 = inlined_call_operand.vmem [shape: f32[1,128], index: 17, kind: input, shape index: {}]   ;;  %s3209_s18 = inlined_call_operand.hbm [shape: f32[2,1,128], index: 18, kind: output, shape index: {}]  }
   0x1   :  { %3226 = sst [smem:[#allocation26_spill]] %s3191_s0 }
   0x2   :  { %3227 = sst [smem:[#allocation27_spill]] %s3192_s1 }
   0x3   :  { %3228 = sst [smem:[#allocation28_spill]] %s3193_s2 }
   0x4   :  { %3229 = sst [smem:[#allocation29_spill]] %s3194_s3 }
   0x5   :  { %3230 = sst [smem:[#allocation30_spill]] %s3200_s9 }
   0x6   :  { %3231 = sst [smem:[#allocation31_spill]] %s3202_s11 }
   0x7   :  { %3232 = sst [smem:[#allocation32_spill]] %s3204_s13 }
   0x8   :  { %3233 = sst [smem:[#allocation33_spill]] %s3205_s14 }
   0x9   :  { %3234 = sst [smem:[#allocation34_spill]] %s3206_s15 }
   0xa   :  { %3235 = sst [smem:[#allocation35_spill]] %s3207_s16 }
   0xb   :  { %3236 = sst [smem:[#allocation36_spill]] %s3208_s17 }
   0xc   :  { %3237 = sst [smem:[#allocation37_spill]] %s3209_s18 }
   0xd   :  { %23 = vsyncpa [#allocation3], 0 }
   0xe   :  { %25 = vsyncpa [#allocation3 + $0x1], 0 }
   0xf   :  { %26 = vsyncpa [#allocation6], 0 }
  0x10   :  { %28 = vsyncpa [#allocation6 + $0x1], 0 }
  0x11   :  { %29 = vsyncpa [#allocation9], 0 }
  0x12   :  { %30 = vsyncpa [#allocation12], 0 }
  0x13   :  { %31 = vsyncpa [#allocation4], 0 }
  0x14   :  { %33 = vsyncpa [#allocation4 + $0x1], 0  ;;  %s2719_s27 = smov 0   ;;  %s2721_s28 = smov 0  }
  0x15   :  { %s2723_s29 = smov 0   ;;  %s2725_s30 = smov 0  }
  0x16 LB: > { %3238 = sst [smem:[#allocation20_spill]] %s2586_s27  ;;  %s2743_s20 = sadd.s32 4294967295, %s2598_s30   ;;  %s2598_s30 = sphi %s2725_s30, %s3271_s30   ;;  %s2594_s29 = sphi %s2723_s29, %s3273_s29   ;;  %s2590_s28 = sphi %s2721_s28, %s3275_s28   ;;  %s2586_s27 = sphi %s2719_s27, %s3274_s27  }
  0x17   : > { %3239 = sst [smem:[#allocation21_spill]] %s2594_s29  ;;  %p1971_p0 = scmp.ge.s32.totalorder %s2598_s30, 1 }
  0x18   : > { %s3240_s3 = sld [smem:[#allocation29_spill]]  ;;  %p60_p1 = scmp.eq.s32.totalorder %s2743_s20, 0 }
  0x19   : > { %p458_p2 = scmp.lt.s32.totalorder %s2598_s30, 3  ;;  %s2600_s22 = smov [#allocation7]  }
  0x1a   : > { %s474_s2 = sshll.u32 %s2600_s22, 4  ;;  %s3242_s11 = sld [smem:[#allocation31_spill]]  ;;  %s475_s2 = int_to_ptr.vmem [resolvable:$true] %s474_s2 }
  0x1b   : > { %p2748_p3 = pnand %p1971_p0, %p458_p2  ;;  %s3244_s13 = sld [smem:[#allocation32_spill]] }
  0x1c   : > { %s2602_s17 = smov 16   ;;  %s2603_s15 = smov 1  }
  0x1d   : > { %p2169_p4 = pneg %p2748_p3  ;;  %s3245_s16 = sld [smem:[#allocation35_spill]] }
  0x1e   : > { %s472_s1 = sshll.u32 %s3240_s3, 4  ;;  %s2601_s3 = smov [#allocation8]   ;;  %s473_s1 = int_to_ptr.hbm [resolvable:$true] %s472_s1 }
  0x1f   : > { %p2760_p6 = pnand %p2169_p4, %p60_p1  ;;  %s509_s18 = sshll.u32 %s2601_s3, 4  ;;  %s510_s18 = int_to_ptr.vmem [resolvable:$true] %s509_s18 }
  0x20   : > { %s507_s25 = sshll.u32 %s3242_s11, 4  ;;  %s2604_s19 = smov [#allocation10]   ;;  %s508_s25 = int_to_ptr.hbm [resolvable:$true] %s507_s25 }
  0x21   : > { %s524_s22 = sshll.u32 %s3244_s13, 4  ;;  %s526_s3 = sshll.u32 %s2604_s19, 4  ;;  %s525_s22 = int_to_ptr.hbm [resolvable:$true] %s524_s22  ;;  %s527_s3 = int_to_ptr.vmem [resolvable:$true] %s526_s3 }
  0x22   : > { %2172 = dma.hbm_to_vmem [thread:$0]  (!%p2760_p6), %s473_s1, 32, %s475_s2, [#allocation6], %s2602_s17, %s2602_s17, %s2603_s15  }
  0x23   : > { %2175 = dma.hbm_to_vmem [thread:$0]  (!%p2760_p6), %s508_s25, 32, %s510_s18, [#allocation9], %s2602_s17, %s2602_s17, %s2603_s15  }
  0x24   : > { %s544_s0 = sshll.u32 %s3245_s16, 4  ;;  %s2605_s1 = smov [#allocation11]   ;;  %s545_s0 = int_to_ptr.hbm [resolvable:$true] %s544_s0 }
  0x25   : > { %2178 = dma.hbm_to_vmem [thread:$0]  (!%p2760_p6), %s525_s22, 32, %s527_s3, [#allocation9], %s2602_s17, %s2602_s17, %s2603_s15  }
  0x26   : > { %s546_s18 = sshll.u32 %s2605_s1, 4  ;;  %s2606_s2 = smov 64   ;;  %s547_s18 = int_to_ptr.vmem [resolvable:$true] %s546_s18 }
  0x27   : > { %s2607_s25 = smov 4   ;;  %s1970_s23 = sadd.s32 4294967294, %s2598_s30  }
  0x28   : > { %2181 = dma.hbm_to_vmem [thread:$0]  (!%p2760_p6), %s545_s0, 256, %s547_s18, [#allocation12], %s2606_s2, %s2606_s2, %s2607_s25  }
  0x29   : > { %s2780_s24 = sadd.s32 1, %s2598_s30   ;;  %s46_s11 = sadd.s32 1, %s2594_s29 }
  0x2a   : > { %3246 = sst [smem:[#allocation22_spill]] %s2780_s24  ;;  %s43_s19 = ssub.s32 %s2598_s30, %s2780_s24 }
  0x2b   : > { %p44_p7 = scmp.eq.s32.totalorder %s43_s19, 0  ;;  %p53_p8 = scmp.ne.s32.totalorder %s2594_s29, %s2590_s28 }
  0x2c   : > { %p54_p9 = scmp.eq.s32.totalorder %s2598_s30, 0  ;;  %p59_p10 = scmp.ne.s32.totalorder %s2590_s28, %s2586_s27 }
  0x2d   : > { %s2791_s15 = scalar_select %p44_p7, %s2594_s29, %s46_s11  }
  0x2e   : > { %p2793_p11 = por %p54_p9, %p53_p8  ;;  %p2799_p12 = por %p60_p1, %p59_p10 }
  0x2f   : > { %3247 = sst [smem:[#allocation23_spill]] %s2791_s15  ;;  %p445_p13 = scmp.eq.s32.totalorder %s2743_s20, 1 }
  0x30   : > { %p451_p0 = scmp.eq.s32.totalorder %s1970_s23, 1  ;;  %p2197_p2 = scmp.lt.s32.totalorder %s2598_s30, 2 }
  0x31   : > { %s2806_s22 = sand.u32 1, %s2594_s29   ;;  %p2808_p4 = por %p445_p13, %p53_p8 }
  0x32   : > { %p2812_p6 = por %p451_p0, %p59_p10  ;;  %s1977_s3 = sshll.u32 %s2806_s22, 3 }
  0x33   : > { %s3250_s11 = scalar_select %p2808_p4, 1, 0 }
  0x34   : > { %s3252_s0 = scalar_select %p2812_p6, 1, 0 }
  0x35   : > { %3251 = sst [smem:[#allocation24_spill]] %s3250_s11  ;;  %s1978_s1 = sshll.u32 %s2598_s30, 3 }
  0x36   : > { %3253 = sst [smem:[#allocation25_spill]] %s3252_s0  ;;  %s567_s23 = scalar_lea.vmem [#allocation2], %s1977_s3 }
  0x37   : > { %s3254_s25 = sld [smem:[#allocation26_spill]]  ;;  %s575_s13 = sshll.u32 %s567_s23, 4  ;;  %s576_s13 = int_to_ptr.vmem [resolvable:$true] %s575_s13 }
  0x38   : > { %p2823_p7 = pnand %p2197_p2, %p2793_p11  ;;  %s582_s29 = sand.u32 1, %s2598_s30  }
  0x39   : > { %s564_s24 = scalar_lea.sflag [#allocation3], %s2806_s22 }
  0x3a   : > { %p2460_p9 = pneg %p2823_p7 }
  0x3d   : > { %s571_s19 = scalar_lea.hbm %s3254_s25, %s1978_s1  ;;  %s2463_s1 = scalar_lea.hbm %s3254_s25, 16 }
  0x3e   : > { %s573_s16 = sshll.u32 %s571_s19, 4  ;;  %s574_s16 = int_to_ptr.hbm [resolvable:$true] %s573_s16 }
  0x3f   : > { %s2456_s0 = sshra.s32 %s574_s16, 4  ;;  %s2457_s0 = int_to_ptr.hbm [resolvable:$true] %s2456_s0 }
  0x40   : > { %s2458_s27 = scalar_lea.hbm %s2457_s0, 8  ;;  %p2464_p11 = scmp.lt.s32.totalorder %s2457_s0, %s3254_s25 }
  0x41   : > { %p2459_p8 = scmp.ne.s32.totalorder %s2457_s0, %s2458_s27  ;;  %p2465_p0 = scmp.lt.s32.totalorder %s2463_s1, %s2458_s27 }
  0x43   : > { %p2461_p10 = pnand %p2460_p9, %p2459_p8  ;;  %p2466_p2 = por %p2465_p0, %p2464_p11 }
  0x45   : > { %p2462_p13 = pneg %p2461_p10 }
  0x47   : > { %p2467_p5 = pnand %p2466_p2, %p2462_p13 }
  0x49   : > { %2470 = shalt.err (!%p2467_p5)
}
  0x4a   : > { %2185 = dma.hbm_to_vmem [thread:$0]  (!%p2823_p7), %s574_s16, 128, %s576_s13, %s564_s24  }
  0x4b   : > { %s3256_s11 = sld [smem:[#allocation27_spill]]  ;;  %s585_s3 = scalar_lea.vmem [#allocation5], %s2806_s22 }
  0x4c   : > { %s592_s17 = sshll.u32 %s585_s3, 4  ;;  %s583_s0 = scalar_lea.sflag [#allocation6], %s582_s29  ;;  %s593_s17 = int_to_ptr.vmem [resolvable:$true] %s592_s17 }
  0x51   : > { %s588_s14 = scalar_lea.hbm %s3256_s11, %s2598_s30  ;;  %s2493_s16 = scalar_lea.hbm %s3256_s11, 2 }
  0x52   : > { %s590_s9 = sshll.u32 %s588_s14, 4  ;;  %s591_s9 = int_to_ptr.hbm [resolvable:$true] %s590_s9 }
  0x53   : > { %s2486_s27 = sshra.s32 %s591_s9, 4  ;;  %s2487_s27 = int_to_ptr.hbm [resolvable:$true] %s2486_s27 }
  0x54   : > { %s2488_s1 = scalar_lea.hbm %s2487_s27, 1  ;;  %p2494_p13 = scmp.lt.s32.totalorder %s2487_s27, %s3256_s11 }
  0x55   : > { %p2489_p5 = scmp.ne.s32.totalorder %s2487_s27, %s2488_s1  ;;  %p2495_p11 = scmp.lt.s32.totalorder %s2493_s16, %s2488_s1 }
  0x57   : > { %p2491_p8 = pnand %p2489_p5, %p2460_p9  ;;  %p2496_p0 = por %p2495_p11, %p2494_p13 }
  0x59   : > { %p2492_p10 = pneg %p2491_p8 }
  0x5b   : > { %p2497_p2 = pnand %p2496_p0, %p2492_p10 }
  0x5d   : > { %2500 = shalt.err (!%p2497_p2)
}
  0x5e   : > { %2188 = dma.hbm_to_vmem [thread:$0]  (!%p2823_p7), %s591_s9, 16, %s593_s17, %s583_s0  }
  0x5f   : > { %601 = sbr.rel (%p2748_p3) target bundleno = 4597 (0x11f5), region = 92  ;;  %s2861_s14 = sand.u32 (!%p2748_p3), 1, %s2590_s28  }
  0x60   : > { %s1980_s29 = sshll.u32 (!%p2748_p3), %s2861_s14, 3  ;;  %s604_s22 = scalar_lea.sflag (!%p2748_p3), [#allocation3], %s2861_s14 }
  0x61   : > { %s607_s19 = scalar_lea.vmem (!%p2748_p3), [#allocation2], %s1980_s29 }
  0x64   : > { %2561 = dma.done.wait (%p2799_p12), %s604_s22, 128  }
  0x65   : > { %2563 = vsyncadd (%p2799_p12), %s604_s22, 4294967168  ;;  %s613_s9 = sand.u32 1, %s2743_s20   ;;  %s616_s15 = scalar_lea.vmem [#allocation5], %s2861_s14 }
  0x66   : > { %s614_s21 = scalar_lea.sflag [#allocation6], %s613_s9 }
  0x67   : > { %2565 = dma.done.wait (%p2799_p12), %s614_s21, 16  }
  0x68   : > { %2567 = vsyncadd (%p2799_p12), %s614_s21, 4294967280 }
  0x69   : > { %2569 = dma.done.wait (%p60_p1), [#allocation6], 32  }
  0x6a   : > { %2571 = vsyncadd (%p60_p1), [#allocation6], 4294967264 }
  0x6b   : > { %2573 = dma.done.wait (%p60_p1), [#allocation9], 64  }
  0x6c   : > { %2575 = vsyncadd (%p60_p1), [#allocation9], 4294967232 }
  0x6d   : > { %2577 = dma.done.wait (%p60_p1), [#allocation12], 256  }
  0x6e   : > { %2579 = vsyncadd (%p60_p1), [#allocation12], 4294967040  ;;  %vm701_vm0 = vcmask 261120   ;;  %v2887_v0 = vld [vmem:[%s607_s19] sm:$0xff]  ;;  %v2608_v2 = vmov 32.0   ;;  %v2609_v14 = vmov 31.0  }
  0x6f   : > { %v702_v1 = vsel %vm701_vm0, %v2887_v0, 0.0  ;;  %2276 = vrcp.f32 %v2608_v2  ;;  %s3257_s3 = sld [smem:[#allocation28_spill]]  ;;  %v2259_v40 = vld [vmem:[%s3201_s10] ss:$0 sm:$0xff]  ;;  %v2260_v47 = vld [vmem:[#allocation8] ss:$0 sm:$0xff] }
  0x70   : > { %703 = vadd.xlane.f32.xlu0 %v702_v1  ;;  %2278 = vrcp.f32 %v2609_v14  ;;  %v2261_v52 = vld [vmem:[#allocation7] ss:$0 sm:$0xff]  ;;  %s2610_s18 = smov 104   ;;  %s2611_s13 = smov 120   ;;  %vm805_vm9 = vcmask 64512   ;;  %vm842_vm10 = vcmask 1043456  }
  0x71   : > { %s2612_s16 = smov 96   ;;  %s2613_s24 = smov 72   ;;  %vm1040_vm11 = vcmask 130048   ;;  %vm1042_vm12 = vcmask 195584  }
  0x72   : > { %s2614_s2 = smov 88   ;;  %s2615_s29 = smov 112  }
  0x73   : > { %s2616_s22 = smov 80   ;;  %s2617_s19 = smov 64  }
  0x74   : > { %s2618_s9 = smov 56   ;;  %s2619_s21 = smov 40  }
  0x75   : > { %v2277_v3 = vpop.eup %2276  ;;  %v2126_v19 = vld [vmem:[%s3257_s3 + $0x8] sm:$0xff]  ;;  %v2125_v20 = vld [vmem:[%s3257_s3] sm:$0xff]  ;;  %s3225_s26 = smov 8   ;;  %s3224_s23 = smov 24  }
  0x76   : > { %v706_v4 = vmul.f32 32.0, %v2277_v3  ;;  %vm710_vm1 = vweird.f32 %v2277_v3  ;;  %v2279_v15 = vpop.eup %2278  ;;  %792 = vmatpush.bf16.msra.mxu0 %v2126_v19  ;;  %s3223_s17 = smov 16   ;;  %s3263_s0 = sld [smem:[#allocation33_spill]] }
  0x77   : > { %v719_v16 = vmul.f32 31.0, %v2279_v15  ;;  %vm723_vm2 = vweird.f32 %v2279_v15 }
  0x78   : > { %v707_v5 = vsub.f32 1.0, %v706_v4 }
  0x79   : > { %v720_v17 = vsub.f32 1.0, %v719_v16 }
  0x7a   : > { %v708_v6 = vmul.f32 %v2277_v3, %v707_v5  ;;  %793 = vmatpush.bf16.msra.mxu0 %v2125_v20 }
  0x7b   : > { %v721_v18 = vmul.f32 %v2279_v15, %v720_v17 }
  0x7c   : > { %v709_v7 = vadd.f32 %v2277_v3, %v708_v6 }
  0x7d   : > { %v722_v21 = vadd.f32 %v2279_v15, %v721_v18 }
  0x7e   : > { %v2891_v8 = vsel %vm710_vm1, %v2277_v3, %v709_v7  ;;  %v2935_v7 = vld [vmem:[%s616_s15] ss:$0 sm:$0xff]  ;;  %s3222_s15 = smov 48  }
  0x7f   : > { %v2902_v22 = vsel %vm723_vm2, %v2279_v15, %v722_v21 }
  0xe3   : > { %v704_v9 = vpop.xlane.xlu0 %703 }
  0xe4   : > { %v712_v10 = vmul.f32 %v2891_v8, %v704_v9 }
  0xe6   : > { %v713_v11 = vsub.f32 %v2887_v0, %v712_v10 }
  0xe8   : > { %v714_v12 = vmul.f32 %v713_v11, %v713_v11  ;;  %v741_v45 = vmul.f32 %v2259_v40, %v713_v11 }
  0xea   : > { %v715_v13 = vsel %vm701_vm0, %v714_v12, 0.0 }
  0xeb   : > { %716 = vadd.xlane.f32.xlu0 %v715_v13 }
 0x15e   : > { %v717_v23 = vpop.xlane.xlu0 %716 }
 0x15f   : > { %v725_v24 = vmul.f32 %v2902_v22, %v717_v23 }
 0x161   : > { %2280 = vrsqrt.f32 %v725_v24  ;;  %vm733_vm3 = vcmp.eq.f32.partialorder %v725_v24, inf  ;;  %v736_v32 = vand.u32 2147483648, %v725_v24  ;;  %vm735_vm4 = vcmp.eq.f32.partialorder %v725_v24, 0.0 }
 0x167   : > { %v2281_v25 = vpop.eup %2280 }
 0x168   : > { %v727_v26 = vmul.f32 %v2281_v25, %v725_v24 }
 0x16a   : > { %v728_v27 = vmul.f32 %v2281_v25, %v727_v26 }
 0x16c   : > { %v729_v28 = vmul.f32 0.5, %v728_v27 }
 0x16e   : > { %v730_v29 = vsub.f32 1.5, %v729_v28 }
 0x170   : > { %v731_v30 = vmul.f32 %v2281_v25, %v730_v29 }
 0x172   : > { %v732_v31 = vmul.f32 %v731_v30, %v725_v24 }
 0x174   : > { %v734_v33 = vsel %vm733_vm3, %v725_v24, %v732_v31 }
 0x175   : > { %v737_v34 = vsel %vm735_vm4, %v736_v32, %v734_v33  ;;  %vm1202_vm4 = vcmask 523264  }
 0x176   : > { %v742_v35 = vadd.f32 1e-06, %v737_v34 }
 0x178   : > { %2282 = vrcp.f32 %v742_v35  ;;  %v754_v39 = vand.u32 2147483648, %v742_v35  ;;  %v752_v42 = vand.u32 2147483647, %v742_v35  ;;  %vm748_vm6 = vweird.f32 %v742_v35 }
 0x17a   : > { %v755_v44 = vor.u32 1.1754944e-38, %v754_v39  ;;  %vm753_vm8 = vcmp.eq.f32.partialorder %v752_v42, 8.507059e+37 }
 0x17e   : > { %v2283_v36 = vpop.eup %2282 }
 0x17f   : > { %v744_v37 = vmul.f32 %v2283_v36, %v742_v35  ;;  %vm749_vm5 = vweird.f32 %v2283_v36 }
 0x180   : > { %vm750_vm7 = vmor %vm748_vm6, %vm749_vm5 }
 0x181   : > { %v745_v38 = vsub.f32 1.0, %v744_v37 }
 0x183   : > { %v746_v41 = vmul.f32 %v2283_v36, %v745_v38 }
 0x185   : > { %v747_v43 = vadd.f32 %v2283_v36, %v746_v41 }
 0x187   : > { %v751_v46 = vsel %vm750_vm7, %v2283_v36, %v747_v43 }
 0x188   : > { %v756_v48 = vsel %vm753_vm8, %v755_v44, %v751_v46 }
 0x189   : > { %v757_v49 = vmul.f32 %v756_v48, %v741_v45 }
 0x18b   : > { %v761_v50 = vadd.f32 %v2260_v47, %v757_v49 }
 0x18d   : > { %v766_v51 = vpack.c.bf16 %v761_v50, %v761_v50 }
 0x18f   : > { %1993 = vmatmul.msk.bf16.vlgmr.msra.gmra.mxu0 %vm701_vm0, %v766_v51 }
 0x20c   : > { %v795_v53 = vpop.f32.mrf.mxu0 }
 0x20d   : > { %v796_v54 = vadd.f32 %v2261_v52, %v795_v53 }
 0x20f   : > { %v799_v55 = vpack.c.bf16 %v796_v54, %v796_v54 }
 0x211   : > { %v801_v56 = vunpack.c.l.b16 %v799_v55 }
 0x213   : > { %v2909_v57 = vpack.c.b16 %v801_v56, %v801_v56 }
 0x214   : > { %v797_v58 = vpop.f32.mrf.mxu0 }
 0x215   : > { %971 = vrot.lane.b32.xlu0 %v2909_v57, %s2610_s18  ;;  %859 = vrot.lane.b32.xlu2 %v2909_v57, %s2611_s13 }
 0x216   : > { %803 = vrot.lane.b32.xlu1 %v2909_v57, %s2612_s16 }
 0x21d   : > { %973 = vrot.lane.b32.xlu2 %v2909_v57, %s2613_s24 }
 0x21e   : > { %861 = vrot.lane.b32.xlu1 %v2909_v57, %s2614_s2 }
 0x225   : > { %915 = vrot.lane.b32.xlu2 %v2909_v57, %s2615_s29 }
 0x226   : > { %917 = vrot.lane.b32.xlu1 %v2909_v57, %s2616_s22 }
 0x26f   : > { %v860_v59 = vpop.permute.xlu2 %859 }
 0x277   : > { %v974_v62 = vpop.permute.xlu2 %973 }
 0x278   : > { %v979_v2 = vsel %vm805_vm9, %v974_v62, 0 }
 0x27f   : > { %v916_v5 = vpop.permute.xlu2 %915 }
 0x287   : > { %v972_v6 = vpop.permute.xlu0 %971 }
 0x288   : > { %v804_v60 = vpop.permute.xlu1 %803 }
 0x289   : > { %v810_v61 = vsel %vm805_vm9, %v804_v60, 0 }
 0x28a   : > { %819 = vmatpush.bf16.xpose.msra.mxu1 %v810_v61 }
 0x290   : > { %v862_v63 = vpop.permute.xlu1 %861 }
 0x291   : > { %1994 = vmatmul.msk.bf16.vlgmr.msra.gmra.mxu1 %vm805_vm9, %v799_v55  ;;  %v867_v1 = vsel %vm805_vm9, %v862_v63, 0 }
 0x292   : > { %876 = vmatpush.bf16.xpose.msra.mxu3 %v867_v1 }
 0x298   : > { %v918_v3 = vpop.permute.xlu1 %917 }
 0x299   : > { %1996 = vmatmul.msk.bf16.vlgmr.msra.gmra.mxu3 %vm805_vm9, %v860_v59  ;;  %v923_v4 = vsel %vm805_vm9, %v918_v3, 0 }
 0x29a   : > { %988 = vmatpush.bf16.xpose.msrb.mxu3 %v979_v2  ;;  %932 = vmatpush.bf16.xpose.msrb.mxu0 %v923_v4 }
 0x2a1   : > { %1998 = vmatmul.msk.bf16.vlgmr.msrb.gmra.mxu0 %vm805_vm9, %v916_v5 }
 0x2a9   : > { %2000 = vmatmul.msk.bf16.vlgmr.msrb.gmra.mxu3 %vm805_vm9, %v972_v6 }
 0x30e   : > { %v821_v9 = vpop.f32.mrf.mxu1 }
 0x30f   : > { %v822_v10 = vadd.f32 %v2935_v7, %v821_v9 }
 0x311   : > { %v825_v11 = vsel %vm805_vm9, %v822_v10, -inf }
 0x312   : > { %826 = vmax.xlane.f32.xlu1 %v825_v11 }
 0x316   : > { %v823_v12 = vpop.f32.mrf.mxu1 }
 0x31c   : > { %v878_v13 = vpop.f32.mrf.mxu3 }
 0x31d   : > { %v879_v14 = vadd.f32 %v2935_v7, %v878_v13 }
 0x31e   : > { %v934_v15 = vpop.f32.mrf.mxu0 }
 0x31f   : > { %v882_v16 = vsel %vm805_vm9, %v879_v14, -inf  ;;  %v935_v17 = vadd.f32 %v2935_v7, %v934_v15 }
 0x320   : > { %883 = vmax.xlane.f32.xlu2 %v882_v16 }
 0x321   : > { %v938_v20 = vsel %vm805_vm9, %v935_v17, -inf }
 0x324   : > { %v880_v18 = vpop.f32.mrf.mxu3 }
 0x325   : > { %v2127_v18 = vld [vmem:[%s3195_s4] sm:$0xff] }
 0x326   : > { %v936_v19 = vpop.f32.mrf.mxu0 }
 0x328   : > { %939 = vmax.xlane.f32.xlu2 %v938_v20 }
 0x32c   : > { %v990_v21 = vpop.f32.mrf.mxu3 }
 0x32d   : > { %v991_v23 = vadd.f32 %v2935_v7, %v990_v21 }
 0x32f   : > { %v994_v24 = vsel %vm805_vm9, %v991_v23, -inf }
 0x330   : > { %995 = vmax.xlane.f32.xlu0 %v994_v24 }
 0x334   : > { %v992_v25 = vpop.f32.mrf.mxu3 }
 0x340   : > { %837 = vrot.lane.b32.xlu2 %v2909_v57, %s2617_s19 }
 0x344   : > { %894 = vrot.lane.b32.xlu0 %v2909_v57, %s2618_s9 }
 0x348   : > { %1006 = vrot.lane.b32.xlu2 %v2909_v57, %s2619_s21 }
 0x34c   : > { %950 = vrot.lane.b32.xlu0 %v2909_v57, %s3222_s15  ;;  %s692_s15 = scalar_lea.vmem [#allocation13], %s2861_s14 }
 0x34d   : > { %s1845_s1 = sshll.u32 %s692_s15, 4  ;;  %s1846_s1 = int_to_ptr.vmem [resolvable:$true] %s1845_s1 }
 0x385   : > { %v827_v26 = vpop.xlane.xlu1 %826 }
 0x386   : > { %v828_v27 = vsub.f32 %v822_v10, %v827_v26 }
 0x388   : > { %v829_v28 = vmul.f32 1.442695, %v828_v27  ;;  %v2263_v27 = vld [vmem:[%s3196_s5] ss:$0 sm:$0xff] }
 0x38a   : > { %2284 = vpow2.f32 %v829_v28 }
 0x390   : > { %v2285_v29 = vpop.eup %2284 }
 0x391   : > { %v831_v30 = vsel %vm805_vm9, %v2285_v29, 0.0 }
 0x392   : > { %832 = vadd.xlane.f32.xlu1 %v831_v30 }
 0x393   : > { %v884_v31 = vpop.xlane.xlu2 %883 }
 0x394   : > { %v885_v32 = vsub.f32 %v879_v14, %v884_v31 }
 0x396   : > { %v886_v33 = vmul.f32 1.442695, %v885_v32 }
 0x398   : > { %2286 = vpow2.f32 %v886_v33 }
 0x39b   : > { %v940_v34 = vpop.xlane.xlu2 %939 }
 0x39c   : > { %v941_v41 = vsub.f32 %v935_v17, %v940_v34  ;;  %v2128_v17 = vld [vmem:[%s3195_s4 + $0x8] sm:$0xff] }
 0x39d   : > { %1070 = vmatpush.bf16.msra.mxu0 %v2128_v17 }
 0x39e   : > { %v2287_v35 = vpop.eup %2286  ;;  %v942_v43 = vmul.f32 1.442695, %v941_v41 }
 0x39f   : > { %v888_v36 = vsel %vm805_vm9, %v2287_v35, 0.0 }
 0x3a0   : > { %889 = vadd.xlane.f32.xlu1 %v888_v36 }
 0x3a1   : > { %1071 = vmatpush.bf16.msra.mxu0 %v2127_v18 }
 0x3a3   : > { %v996_v37 = vpop.xlane.xlu0 %995  ;;  %v838_v38 = vpop.permute.xlu2 %837 }
 0x3a4   : > { %v997_v39 = vsub.f32 %v991_v23, %v996_v37  ;;  %v844_v40 = vsel %vm842_vm10, %v838_v38, 0  ;;  %v2129_v38 = vld [vmem:[%s3197_s6] sm:$0xff] }
 0x3a5   : > { %853 = vmatpush.bf16.msra.mxu2 %v844_v40 }
 0x3a6   : > { %v998_v42 = vmul.f32 1.442695, %v997_v39 }
 0x3a8   : > { %2288 = vpow2.f32 %v998_v42 }
 0x3a9   : > { %2290 = vpow2.f32 %v942_v43 }
 0x3ab   : > { %v1007_v55 = vpop.permute.xlu2 %1006 }
 0x3ac   : > { %v1012_v57 = vsel %vm842_vm10, %v1007_v55, 0 }
 0x3ae   : > { %v2289_v44 = vpop.eup %2288 }
 0x3af   : > { %v1000_v45 = vsel %vm805_vm9, %v2289_v44, 0.0  ;;  %v2291_v46 = vpop.eup %2290 }
 0x3b0   : > { %1001 = vadd.xlane.f32.xlu1 %v1000_v45  ;;  %v944_v49 = vsel %vm805_vm9, %v2291_v46, 0.0 }
 0x3b6   : > { %v895_v47 = vpop.permute.xlu0 %894 }
 0x3b7   : > { %v900_v48 = vsel %vm842_vm10, %v895_v47, 0 }
 0x3b8   : > { %909 = vmatpush.bf16.msrb.mxu2 %v900_v48  ;;  %945 = vadd.xlane.f32.xlu1 %v944_v49  ;;  %v2133_v48 = vld [vmem:[%s3199_s8 + $0x10] sm:$0xff] }
 0x3be   : > { %v951_v50 = vpop.permute.xlu0 %950 }
 0x3bf   : > { %v956_v51 = vsel %vm842_vm10, %v951_v50, 0 }
 0x3c0   : > { %965 = vmatpush.bf16.msrb.mxu1 %v956_v51 }
 0x405   : > { %v833_v52 = vpop.xlane.xlu1 %832 }
 0x406   : > { %2292 = vrcp.f32 %v833_v52 }
 0x40c   : > { %v2293_v53 = vpop.eup %2292 }
 0x40d   : > { %v835_v54 = vmul.f32 %v2293_v53, %v2285_v29 }
 0x40f   : > { %v836_v56 = vpack.c.bf16 %v835_v54, %v835_v54 }
 0x411   : > { %1995 = vmatmul.msk.bf16.vlgmr.msra.gmra.mxu2 %vm805_vm9, %v836_v56 }
 0x412   : > { %1021 = vmatpush.bf16.msra.mxu2 %v1012_v57 }
 0x413   : > { %v890_v58 = vpop.xlane.xlu1 %889 }
 0x414   : > { %2294 = vrcp.f32 %v890_v58  ;;  %v2264_v58 = vld [vmem:[%s3203_s12] ss:$0 sm:$0xff] }
 0x41a   : > { %v2295_v59 = vpop.eup %2294 }
 0x41b   : > { %v892_v60 = vmul.f32 %v2295_v59, %v2287_v35 }
 0x41d   : > { %v893_v61 = vpack.c.bf16 %v892_v60, %v892_v60 }
 0x421   : > { %1997 = vmatmul.msk.bf16.vlgmr.msrb.gmra.mxu2 %vm805_vm9, %v893_v61 }
 0x423   : > { %v1002_v62 = vpop.xlane.xlu1 %1001 }
 0x424   : > { %2296 = vrcp.f32 %v1002_v62 }
 0x42a   : > { %v2297_v63 = vpop.eup %2296 }
 0x42b   : > { %v1004_v1 = vmul.f32 %v2297_v63, %v2289_v44  ;;  %v946_v2 = vpop.xlane.xlu1 %945 }
 0x42c   : > { %2298 = vrcp.f32 %v946_v2  ;;  %v2265_v2 = vld [vmem:[#allocation10] ss:$0 sm:$0xff] }
 0x42d   : > { %v1005_v3 = vpack.c.bf16 %v1004_v1, %v1004_v1 }
 0x431   : > { %2001 = vmatmul.msk.bf16.vlgmr.msra.gmra.mxu2 %vm805_vm9, %v1005_v3 }
 0x432   : > { %v2299_v4 = vpop.eup %2298 }
 0x433   : > { %v948_v5 = vmul.f32 %v2299_v4, %v2291_v46  ;;  %v2134_v46 = vld [vmem:[%s3199_s8 + $0x18] sm:$0xff] }
 0x434   : > { %1210 = vmatpush.bf16.msra.mxu3 %v2134_v46 }
 0x435   : > { %v949_v6 = vpack.c.bf16 %v948_v5, %v948_v5 }
 0x437   : > { %1999 = vmatmul.msk.bf16.vlgmr.msrb.gmra.mxu1 %vm805_vm9, %v949_v6 }
 0x438   : > { %1211 = vmatpush.bf16.msra.mxu3 %v2133_v48 }
 0x494   : > { %v855_v9 = vpop.f32.mrf.mxu2 }
 0x49c   : > { %v857_v10 = vpop.f32.mrf.mxu2 }
 0x49d   : > { %v2131_v10 = vld [vmem:[%s3199_s8] sm:$0xff] }
 0x4a4   : > { %v911_v11 = vpop.f32.mrf.mxu2 }
 0x4a5   : > { %1028 = vrot.lane.b32.xlu1 %v911_v11, %s3225_s26  ;;  %v2266_v11 = vld [vmem:[%s3198_s7] ss:$0 sm:$0xff]  ;;  %s3258_s26 = sld [smem:[#allocation30_spill]] }
 0x4ab   : > { %v2267_v17 = vld [vmem:[%s3258_s26] ss:$0 sm:$0xff] }
 0x4ac   : > { %v913_v12 = vpop.f32.mrf.mxu2 }
 0x4b4   : > { %v967_v13 = vpop.f32.mrf.mxu1  ;;  %v1023_v14 = vpop.f32.mrf.mxu2 }
 0x4b5   : > { %1036 = vrot.lane.b32.xlu0 %v1023_v14, %s3224_s23  ;;  %1032 = vrot.lane.b32.xlu2 %v967_v13, %s3223_s17  ;;  %s1835_s17 = scalar_lea.sflag [#allocation4], %s2861_s14 }
 0x4bc   : > { %v969_v15 = vpop.f32.mrf.mxu1  ;;  %v1025_v16 = vpop.f32.mrf.mxu2 }
 0x50f   : > { %v1033_v21 = vpop.permute.xlu2 %1032 }
 0x517   : > { %v1029_v19 = vpop.permute.xlu1 %1028 }
 0x518   : > { %v1039_v20 = vsel %vm805_vm9, %v855_v9, %v1029_v19  ;;  %v2132_v9 = vld [vmem:[%s3199_s8 + $0x8] sm:$0xff] }
 0x519   : > { %v1041_v24 = vsel %vm1040_vm11, %v1039_v20, %v1033_v21  ;;  %1212 = vmatpush.bf16.msra.mxu3 %v2132_v9 }
 0x51d   : > { %1213 = vmatpush.bf16.msra.mxu3 %v2131_v10 }
 0x527   : > { %v1037_v23 = vpop.permute.xlu0 %1036 }
 0x528   : > { %v1043_v25 = vsel %vm1042_vm12, %v1041_v24, %v1037_v23 }
 0x529   : > { %v1048_v26 = vpack.c.bf16 %v1043_v25, %v1043_v25 }
 0x52b   : > { %2010 = vmatmul.msk.bf16.vlgmr.msra.gmra.mxu0 %vm701_vm0, %v1048_v26 }
 0x5a8   : > { %v1073_v28 = vpop.f32.mrf.mxu0 }
 0x5a9   : > { %v1077_v29 = vadd.f32 %v1073_v28, %v2887_v0  ;;  %v2130_v0 = vld [vmem:[%s3197_s6 + $0x8] sm:$0xff] }
 0x5aa   : > { %1161 = vmatpush.bf16.msra.mxu1 %v2130_v0 }
 0x5ab   : > { %v2982_v30 = vadd.f32 %v2263_v27, %v1077_v29  ;;  %v2136_v29 = vld [vmem:[%s3257_s3 + $0x18] sm:$0xff] }
 0x5ac   : > { %1307 = vmatpush.bf16.msrb.mxu2 %v2136_v29 }
 0x5ad   : > { %v1085_v31 = vsel %vm701_vm0, %v2982_v30, 0.0 }
 0x5ae   : > { %1086 = vadd.xlane.f32.xlu2 %v1085_v31  ;;  %1162 = vmatpush.bf16.msra.mxu1 %v2129_v38 }
 0x5b0   : > { %v1075_v32 = vpop.f32.mrf.mxu0 }
 0x621   : > { %v1087_v33 = vpop.xlane.xlu2 %1086 }
 0x622   : > { %v1088_v34 = vmul.f32 %v1087_v33, %v2891_v8 }
 0x624   : > { %v1089_v35 = vsub.f32 %v2982_v30, %v1088_v34 }
 0x626   : > { %v1090_v36 = vmul.f32 %v1089_v35, %v1089_v35  ;;  %v1110_v63 = vmul.f32 %v2264_v58, %v1089_v35 }
 0x628   : > { %v1091_v37 = vsel %vm701_vm0, %v1090_v36, 0.0 }
 0x629   : > { %1092 = vadd.xlane.f32.xlu0 %v1091_v37 }
 0x69c   : > { %v1093_v39 = vpop.xlane.xlu0 %1092 }
 0x69d   : > { %v1094_v40 = vmul.f32 %v1093_v39, %v2902_v22 }
 0x69f   : > { %2300 = vrsqrt.f32 %v1094_v40  ;;  %vm1102_vm13 = vcmp.eq.f32.partialorder %v1094_v40, inf  ;;  %v1105_v50 = vand.u32 2147483648, %v1094_v40  ;;  %vm1104_vm14 = vcmp.eq.f32.partialorder %v1094_v40, 0.0 }
 0x6a5   : > { %v2301_v41 = vpop.eup %2300 }
 0x6a6   : > { %v1096_v42 = vmul.f32 %v2301_v41, %v1094_v40 }
 0x6a8   : > { %v1097_v43 = vmul.f32 %v2301_v41, %v1096_v42 }
 0x6aa   : > { %v1098_v44 = vmul.f32 0.5, %v1097_v43 }
 0x6ac   : > { %v1099_v45 = vsub.f32 1.5, %v1098_v44 }
 0x6ae   : > { %v1100_v47 = vmul.f32 %v2301_v41, %v1099_v45 }
 0x6b0   : > { %v1101_v49 = vmul.f32 %v1100_v47, %v1094_v40  ;;  %v2268_v47 = vld [vmem:[%s3201_s10 + $0x1] ss:$0 sm:$0xff] }
 0x6b2   : > { %v1103_v51 = vsel %vm1102_vm13, %v1094_v40, %v1101_v49 }
 0x6b3   : > { %v1106_v52 = vsel %vm1104_vm14, %v1105_v50, %v1103_v51 }
 0x6b4   : > { %v1111_v53 = vadd.f32 1e-06, %v1106_v52 }
 0x6b6   : > { %2302 = vrcp.f32 %v1111_v53  ;;  %v1123_v57 = vand.u32 2147483648, %v1111_v53  ;;  %v1121_v60 = vand.u32 2147483647, %v1111_v53  ;;  %vm1117_vm1 = vweird.f32 %v1111_v53 }
 0x6b8   : > { %v1124_v62 = vor.u32 1.1754944e-38, %v1123_v57  ;;  %vm1122_vm3 = vcmp.eq.f32.partialorder %v1121_v60, 8.507059e+37 }
 0x6bc   : > { %v2303_v54 = vpop.eup %2302 }
 0x6bd   : > { %v1113_v55 = vmul.f32 %v2303_v54, %v1111_v53  ;;  %vm1118_vm15 = vweird.f32 %v2303_v54 }
 0x6be   : > { %vm1119_vm2 = vmor %vm1117_vm1, %vm1118_vm15 }
 0x6bf   : > { %v1114_v56 = vsub.f32 1.0, %v1113_v55 }
 0x6c1   : > { %v1115_v59 = vmul.f32 %v2303_v54, %v1114_v56 }
 0x6c3   : > { %v1116_v61 = vadd.f32 %v2303_v54, %v1115_v59  ;;  %v2270_v59 = vld [vmem:[#allocation7 + $0x1] ss:$0 sm:$0xff] }
 0x6c5   : > { %v1120_v1 = vsel %vm1119_vm2, %v2303_v54, %v1116_v61  ;;  %v2269_v54 = vld [vmem:[#allocation8 + $0x1] ss:$0 sm:$0xff]  ;;  %vm1745_vm2 = vcmask 253952  }
 0x6c6   : > { %v1125_v3 = vsel %vm1122_vm3, %v1124_v62, %v1120_v1 }
 0x6c7   : > { %v1126_v4 = vmul.f32 %v1125_v3, %v1110_v63 }
 0x6c9   : > { %v1130_v5 = vadd.f32 %v2265_v2, %v1126_v4 }
 0x6cb   : > { %v1135_v6 = vpack.c.bf16 %v1130_v5, %v1130_v5 }
 0x6cd   : > { %2019 = vmatmul.msk.bf16.vlgmr.msra.gmra.mxu1 %vm701_vm0, %v1135_v6 }
 0x74a   : > { %v1164_v12 = vpop.f32.mrf.mxu1 }
 0x74b   : > { %v1165_v13 = vadd.f32 %v2266_v11, %v1164_v12 }
 0x74d   : > { %v1168_v14 = vmax.f32 %v1165_v13, 0.0 }
 0x74f   : > { %v1177_v15 = vpack.c.bf16 %v1168_v14, %v1168_v14 }
 0x751   : > { %2036 = vmatmul.msk.bf16.vlgmr.msra.gmra.mxu3 %vm1202_vm4, %v1177_v15 }
 0x752   : > { %v1166_v16 = vpop.f32.mrf.mxu1 }
 0x7d4   : > { %v1215_v18 = vpop.f32.mrf.mxu3 }
 0x7d5   : > { %v1219_v19 = vadd.f32 %v1215_v18, %v2982_v30  ;;  %v2135_v30 = vld [vmem:[%s3257_s3 + $0x10] sm:$0xff] }
 0x7d6   : > { %1308 = vmatpush.bf16.msrb.mxu2 %v2135_v30 }
 0x7d7   : > { %v3020_v20 = vadd.f32 %v2267_v17, %v1219_v19 }
 0x7d9   : > { %v1229_v21 = vsel %vm701_vm0, %v3020_v20, 0.0 }
 0x7da   : > { %1230 = vadd.xlane.f32.xlu1 %v1229_v21 }
 0x7dc   : > { %v1217_v23 = vpop.f32.mrf.mxu3 }
 0x84d   : > { %v1231_v24 = vpop.xlane.xlu1 %1230 }
 0x84e   : > { %v1232_v25 = vmul.f32 %v1231_v24, %v2891_v8 }
 0x850   : > { %v1233_v26 = vsub.f32 %v3020_v20, %v1232_v25 }
 0x852   : > { %v1234_v27 = vmul.f32 %v1233_v26, %v1233_v26  ;;  %v1254_v52 = vmul.f32 %v2268_v47, %v1233_v26 }
 0x854   : > { %v1235_v28 = vsel %vm701_vm0, %v1234_v27, 0.0 }
 0x855   : > { %1236 = vadd.xlane.f32.xlu2 %v1235_v28 }
 0x8c8   : > { %v1237_v31 = vpop.xlane.xlu2 %1236 }
 0x8c9   : > { %v1238_v32 = vmul.f32 %v1237_v31, %v2902_v22 }
 0x8cb   : > { %2304 = vrsqrt.f32 %v1238_v32  ;;  %vm1246_vm5 = vcmp.eq.f32.partialorder %v1238_v32, inf  ;;  %v1249_v39 = vand.u32 2147483648, %v1238_v32  ;;  %vm1248_vm6 = vcmp.eq.f32.partialorder %v1238_v32, 0.0 }
 0x8d1   : > { %v2305_v33 = vpop.eup %2304 }
 0x8d2   : > { %v1240_v34 = vmul.f32 %v2305_v33, %v1238_v32 }
 0x8d4   : > { %v1241_v35 = vmul.f32 %v2305_v33, %v1240_v34 }
 0x8d6   : > { %v1242_v36 = vmul.f32 0.5, %v1241_v35 }
 0x8d8   : > { %v1243_v37 = vsub.f32 1.5, %v1242_v36 }
 0x8da   : > { %v1244_v0 = vmul.f32 %v2305_v33, %v1243_v37 }
 0x8dc   : > { %v1245_v38 = vmul.f32 %v1244_v0, %v1238_v32 }
 0x8de   : > { %v1247_v40 = vsel %vm1246_vm5, %v1238_v32, %v1245_v38 }
 0x8df   : > { %v1250_v41 = vsel %vm1248_vm6, %v1249_v39, %v1247_v40 }
 0x8e0   : > { %v1255_v42 = vadd.f32 1e-06, %v1250_v41 }
 0x8e2   : > { %2306 = vrcp.f32 %v1255_v42  ;;  %v1267_v46 = vand.u32 2147483648, %v1255_v42  ;;  %v1265_v49 = vand.u32 2147483647, %v1255_v42  ;;  %vm1261_vm8 = vweird.f32 %v1255_v42 }
 0x8e4   : > { %v1268_v51 = vor.u32 1.1754944e-38, %v1267_v46  ;;  %vm1266_vm14 = vcmp.eq.f32.partialorder %v1265_v49, 8.507059e+37 }
 0x8e8   : > { %v2307_v43 = vpop.eup %2306 }
 0x8e9   : > { %v1257_v44 = vmul.f32 %v2307_v43, %v1255_v42  ;;  %vm1262_vm7 = vweird.f32 %v2307_v43 }
 0x8ea   : > { %vm1263_vm13 = vmor %vm1261_vm8, %vm1262_vm7 }
 0x8eb   : > { %v1258_v45 = vsub.f32 1.0, %v1257_v44 }
 0x8ed   : > { %v1259_v48 = vmul.f32 %v2307_v43, %v1258_v45 }
 0x8ef   : > { %v1260_v50 = vadd.f32 %v2307_v43, %v1259_v48 }
 0x8f1   : > { %v1264_v53 = vsel %vm1263_vm13, %v2307_v43, %v1260_v50  ;;  %vm1820_vm13 = vcmask 1040384  }
 0x8f2   : > { %v1269_v55 = vsel %vm1266_vm14, %v1268_v51, %v1264_v53 }
 0x8f3   : > { %v1270_v56 = vmul.f32 %v1269_v55, %v1254_v52 }
 0x8f5   : > { %v1274_v57 = vadd.f32 %v2269_v54, %v1270_v56 }
 0x8f7   : > { %v1280_v58 = vpack.c.bf16 %v1274_v57, %v1274_v57 }
 0x8f9   : > { %2050 = vmatmul.msk.bf16.vlgmr.msrb.gmra.mxu2 %vm701_vm0, %v1280_v58 }
 0x97c   : > { %v1310_v60 = vpop.f32.mrf.mxu2 }
 0x97d   : > { %v1311_v61 = vadd.f32 %v2270_v59, %v1310_v60 }
 0x97f   : > { %v1314_v62 = vpack.c.bf16 %v1311_v61, %v1311_v61 }
 0x981   : > { %v1316_v63 = vunpack.c.l.b16 %v1314_v62 }
 0x983   : > { %v3038_v1 = vpack.c.b16 %v1316_v63, %v1316_v63 }
 0x984   : > { %v1312_v2 = vpop.f32.mrf.mxu2 }
 0x985   : > { %1318 = vrot.lane.b32.xlu1 %v3038_v1, %s2612_s16  ;;  %1372 = vrot.lane.b32.xlu2 %v3038_v1, %s2611_s13  ;;  %s3260_s13 = smov 8   ;;  %s3261_s16 = smov 24  }
 0x986   : > { %1374 = vrot.lane.b32.xlu0 %v3038_v1, %s2614_s2  ;;  %s3265_s2 = sld [smem:[#allocation36_spill]] }
 0x98d   : > { %1428 = vrot.lane.b32.xlu1 %v3038_v1, %s2615_s29  ;;  %1430 = vrot.lane.b32.xlu2 %v3038_v1, %s2616_s22 }
 0x98e   : > { %1486 = vrot.lane.b32.xlu0 %v3038_v1, %s2613_s24  ;;  %s3262_s24 = smov 16  }
 0x996   : > { %1484 = vrot.lane.b32.xlu0 %v3038_v1, %s2610_s18  ;;  %s3259_s18 = smov 48  }
 0x9df   : > { %v1373_v3 = vpop.permute.xlu2 %1372 }
 0x9e7   : > { %v1431_v4 = vpop.permute.xlu2 %1430 }
 0x9e8   : > { %v1436_v10 = vsel %vm805_vm9, %v1431_v4, 0 }
 0x9f7   : > { %v1319_v5 = vpop.permute.xlu1 %1318 }
 0x9f8   : > { %v1324_v6 = vsel %vm805_vm9, %v1319_v5, 0  ;;  %v1375_v9 = vpop.permute.xlu0 %1374 }
 0x9f9   : > { %v1380_v11 = vsel %vm805_vm9, %v1375_v9, 0  ;;  %1333 = vmatpush.bf16.xpose.msrb.mxu0 %v1324_v6 }
 0x9fa   : > { %1389 = vmatpush.bf16.xpose.msrb.mxu3 %v1380_v11 }
 0x9ff   : > { %v1429_v14 = vpop.permute.xlu1 %1428 }
 0xa00   : > { %v1487_v12 = vpop.permute.xlu0 %1486  ;;  %2051 = vmatmul.msk.bf16.vlgmr.msrb.gmra.mxu0 %vm805_vm9, %v1314_v62 }
 0xa01   : > { %1445 = vmatpush.bf16.xpose.msra.mxu0 %v1436_v10  ;;  %v1492_v13 = vsel %vm805_vm9, %v1487_v12, 0  ;;  %2053 = vmatmul.msk.bf16.vlgmr.msrb.gmra.mxu3 %vm805_vm9, %v1373_v3 }
 0xa02   : > { %1501 = vmatpush.bf16.xpose.msra.mxu3 %v1492_v13 }
 0xa08   : > { %v1485_v15 = vpop.permute.xlu0 %1484 }
 0xa10   : > { %2055 = vmatmul.msk.bf16.vlgmr.msra.gmra.mxu0 %vm805_vm9, %v1429_v14 }
 0xa11   : > { %2057 = vmatmul.msk.bf16.vlgmr.msra.gmra.mxu3 %vm805_vm9, %v1485_v15 }
 0xa7d   : > { %v1335_v16 = vpop.f32.mrf.mxu0 }
 0xa7e   : > { %v1336_v17 = vadd.f32 %v2935_v7, %v1335_v16 }
 0xa80   : > { %v1339_v18 = vsel %vm805_vm9, %v1336_v17, -inf }
 0xa81   : > { %1340 = vmax.xlane.f32.xlu2 %v1339_v18 }
 0xa84   : > { %v1391_v19 = vpop.f32.mrf.mxu3 }
 0xa85   : > { %v1392_v21 = vadd.f32 %v2935_v7, %v1391_v19  ;;  %v1337_v23 = vpop.f32.mrf.mxu0 }
 0xa87   : > { %v1395_v24 = vsel %vm805_vm9, %v1392_v21, -inf }
 0xa88   : > { %1396 = vmax.xlane.f32.xlu0 %v1395_v24 }
 0xa8c   : > { %v1393_v25 = vpop.f32.mrf.mxu3 }
 0xa8d   : > { %v1447_v26 = vpop.f32.mrf.mxu0  ;;  %v2138_v25 = vld [vmem:[%s3195_s4 + $0x18] sm:$0xff] }
 0xa8e   : > { %v1448_v27 = vadd.f32 %v2935_v7, %v1447_v26  ;;  %1582 = vmatpush.bf16.msrb.mxu0 %v2138_v25  ;;  %v2137_v26 = vld [vmem:[%s3195_s4 + $0x10] sm:$0xff] }
 0xa90   : > { %v1451_v28 = vsel %vm805_vm9, %v1448_v27, -inf }
 0xa91   : > { %1452 = vmax.xlane.f32.xlu0 %v1451_v28 }
 0xa92   : > { %1583 = vmatpush.bf16.msrb.mxu0 %v2137_v26 }
 0xa94   : > { %v1503_v29 = vpop.f32.mrf.mxu3 }
 0xa95   : > { %v1504_v30 = vadd.f32 %v2935_v7, %v1503_v29  ;;  %v1449_v31 = vpop.f32.mrf.mxu0 }
 0xa97   : > { %v1507_v32 = vsel %vm805_vm9, %v1504_v30, -inf }
 0xa98   : > { %1508 = vmax.xlane.f32.xlu1 %v1507_v32 }
 0xa9c   : > { %v1505_v33 = vpop.f32.mrf.mxu3 }
 0xaa5   : > { %1407 = vrot.lane.b32.xlu0 %v3038_v1, %s2618_s9 }
 0xaad   : > { %1519 = vrot.lane.b32.xlu0 %v3038_v1, %s2619_s21 }
 0xaf4   : > { %v1341_v34 = vpop.xlane.xlu2 %1340 }
 0xaf5   : > { %v1342_v35 = vsub.f32 %v1336_v17, %v1341_v34  ;;  %v2271_v34 = vld [vmem:[%s3196_s5 + $0x1] ss:$0 sm:$0xff] }
 0xaf7   : > { %v1343_v36 = vmul.f32 1.442695, %v1342_v35 }
 0xaf9   : > { %2308 = vpow2.f32 %v1343_v36 }
 0xafb   : > { %v1397_v37 = vpop.xlane.xlu0 %1396 }
 0xafc   : > { %v1398_v0 = vsub.f32 %v1392_v21, %v1397_v37 }
 0xafe   : > { %v1399_v38 = vmul.f32 1.442695, %v1398_v0 }
 0xaff   : > { %v2309_v39 = vpop.eup %2308 }
 0xb00   : > { %2310 = vpow2.f32 %v1399_v38  ;;  %v1345_v7 = vsel %vm805_vm9, %v2309_v39, 0.0 }
 0xb01   : > { %1346 = vadd.xlane.f32.xlu1 %v1345_v7 }
 0xb04   : > { %v1453_v40 = vpop.xlane.xlu0 %1452 }
 0xb05   : > { %v1454_v41 = vsub.f32 %v1448_v27, %v1453_v40 }
 0xb06   : > { %v2311_v42 = vpop.eup %2310 }
 0xb07   : > { %v1455_v43 = vmul.f32 1.442695, %v1454_v41  ;;  %v1401_v44 = vsel %vm805_vm9, %v2311_v42, 0.0 }
 0xb08   : > { %1402 = vadd.xlane.f32.xlu2 %v1401_v44 }
 0xb09   : > { %2312 = vpow2.f32 %v1455_v43  ;;  %v2139_v43 = vld [vmem:[%s3197_s6 + $0x10] sm:$0xff] }
 0xb0b   : > { %v1509_v45 = vpop.xlane.xlu1 %1508 }
 0xb0c   : > { %v1510_v46 = vsub.f32 %v1504_v30, %v1509_v45 }
 0xb0e   : > { %v1511_v47 = vmul.f32 1.442695, %v1510_v46 }
 0xb0f   : > { %v2313_v48 = vpop.eup %2312 }
 0xb10   : > { %2314 = vpow2.f32 %v1511_v47  ;;  %v1457_v49 = vsel %vm805_vm9, %v2313_v48, 0.0 }
 0xb11   : > { %1458 = vadd.xlane.f32.xlu1 %v1457_v49 }
 0xb16   : > { %v2315_v50 = vpop.eup %2314 }
 0xb17   : > { %v1408_v51 = vpop.permute.xlu0 %1407  ;;  %v1513_v53 = vsel %vm805_vm9, %v2315_v50, 0.0 }
 0xb18   : > { %v1413_v52 = vsel %vm842_vm10, %v1408_v51, 0  ;;  %v2144_v51 = vld [vmem:[%s3199_s8 + $0x38] sm:$0xff] }
 0xb19   : > { %1422 = vmatpush.bf16.msra.mxu2 %v1413_v52  ;;  %1514 = vadd.xlane.f32.xlu1 %v1513_v53  ;;  %v2143_v53 = vld [vmem:[%s3199_s8 + $0x30] sm:$0xff] }
 0xb1a   : > { %1727 = vmatpush.bf16.msrb.mxu3 %v2144_v51  ;;  %v1743_v51 = vld [vmem:[%s3263_s0] sm:$0x1] }
 0xb1e   : > { %1728 = vmatpush.bf16.msrb.mxu3 %v2143_v53 }
 0xb1f   : > { %v1520_v54 = vpop.permute.xlu0 %1519 }
 0xb20   : > { %v1525_v55 = vsel %vm842_vm10, %v1520_v54, 0  ;;  %1351 = vrot.lane.b32.xlu2 %v3038_v1, %s2617_s19  ;;  %s3266_s19 = sld [smem:[#allocation37_spill]] }
 0xb21   : > { %1534 = vmatpush.bf16.msrb.mxu2 %v1525_v55 }
 0xb26   : > { %s1843_s21 = scalar_lea.hbm %s3266_s19, %s2743_s20  ;;  %s2536_s20 = scalar_lea.hbm %s3266_s19, 2 }
 0xb27   : > { %s1847_s23 = sshll.u32 %s1843_s21, 4  ;;  %s1848_s23 = int_to_ptr.hbm [resolvable:$true] %s1847_s23 }
 0xb28   : > { %s2530_s0 = sshra.s32 %s1848_s23, 4  ;;  %s2531_s0 = int_to_ptr.hbm [resolvable:$true] %s2530_s0 }
 0xb29   : > { %s2532_s27 = scalar_lea.hbm %s2531_s0, 1  ;;  %p2537_p7 = scmp.lt.s32.totalorder %s2531_s0, %s3266_s19 }
 0xb2a   : > { %p2533_p1 = scmp.ne.s32.totalorder %s2531_s0, %s2532_s27  ;;  %p2538_p9 = scmp.lt.s32.totalorder %s2536_s20, %s2532_s27 }
 0xb2c   : > { %p2534_p3 = pnand %p2533_p1, %p2808_p4  ;;  %p2539_p5 = por %p2538_p9, %p2537_p7 }
 0xb2e   : > { %p2535_p12 = pneg %p2534_p3 }
 0xb30   : > { %p2540_p8 = pnand %p2539_p5, %p2535_p12 }
 0xb32   : > { %1463 = vrot.lane.b32.xlu1 %v3038_v1, %s3259_s18 }
 0xb74   : > { %v1347_v56 = vpop.xlane.xlu1 %1346 }
 0xb75   : > { %2316 = vrcp.f32 %v1347_v56 }
 0xb7b   : > { %v1403_v57 = vpop.xlane.xlu2 %1402  ;;  %v2317_v58 = vpop.eup %2316 }
 0xb7c   : > { %2318 = vrcp.f32 %v1403_v57  ;;  %v1349_v60 = vmul.f32 %v2317_v58, %v2309_v39 }
 0xb7e   : > { %v1350_v4 = vpack.c.bf16 %v1349_v60, %v1349_v60 }
 0xb82   : > { %v2319_v59 = vpop.eup %2318 }
 0xb83   : > { %v1405_v61 = vmul.f32 %v2319_v59, %v2311_v42  ;;  %v1352_v62 = vpop.permute.xlu2 %1351 }
 0xb84   : > { %v1357_v63 = vsel %vm842_vm10, %v1352_v62, 0  ;;  %v1459_v2 = vpop.xlane.xlu1 %1458 }
 0xb85   : > { %v1406_v3 = vpack.c.bf16 %v1405_v61, %v1405_v61  ;;  %1366 = vmatpush.bf16.msrb.mxu1 %v1357_v63  ;;  %v2272_v63 = vld [vmem:[%s3203_s12 + $0x1] ss:$0 sm:$0xff] }
 0xb87   : > { %2054 = vmatmul.msk.bf16.vlgmr.msra.gmra.mxu2 %vm805_vm9, %v1406_v3 }
 0xb88   : > { %2052 = vmatmul.msk.bf16.vlgmr.msrb.gmra.mxu1 %vm805_vm9, %v1350_v4 }
 0xb8c   : > { %v1515_v1 = vpop.xlane.xlu1 %1514 }
 0xb8d   : > { %2320 = vrcp.f32 %v1515_v1 }
 0xb8e   : > { %2322 = vrcp.f32 %v1459_v2 }
 0xb93   : > { %v2321_v5 = vpop.eup %2320 }
 0xb94   : > { %v1517_v6 = vmul.f32 %v2321_v5, %v2315_v50  ;;  %v2323_v10 = vpop.eup %2322 }
 0xb95   : > { %v1461_v11 = vmul.f32 %v2323_v10, %v2313_v48 }
 0xb96   : > { %v1518_v9 = vpack.c.bf16 %v1517_v6, %v1517_v6 }
 0xb97   : > { %v1462_v14 = vpack.c.bf16 %v1461_v11, %v1461_v11 }
 0xb98   : > { %2058 = vmatmul.msk.bf16.vlgmr.msrb.gmra.mxu2 %vm805_vm9, %v1518_v9  ;;  %v2273_v9 = vld [vmem:[#allocation10 + $0x1] ss:$0 sm:$0xff] }
 0xba4   : > { %v1464_v12 = vpop.permute.xlu1 %1463 }
 0xba5   : > { %v1469_v13 = vsel %vm842_vm10, %v1464_v12, 0 }
 0xba6   : > { %1478 = vmatpush.bf16.msra.mxu1 %v1469_v13 }
 0xba9   : > { %2056 = vmatmul.msk.bf16.vlgmr.msra.gmra.mxu1 %vm805_vm9, %v1462_v14  ;;  %v2142_v14 = vld [vmem:[%s3199_s8 + $0x28] sm:$0xff] }
 0xbaa   : > { %1729 = vmatpush.bf16.msrb.mxu3 %v2142_v14 }
 0xc05   : > { %v1368_v15 = vpop.f32.mrf.mxu1 }
 0xc0a   : > { %v1424_v16 = vpop.f32.mrf.mxu2 }
 0xc0b   : > { %1541 = vrot.lane.b32.xlu2 %v1424_v16, %s3260_s13  ;;  %v2274_v16 = vld [vmem:[%s3198_s7 + $0x1] ss:$0 sm:$0xff]  ;;  %s3264_s13 = sld [smem:[#allocation34_spill]] }
 0xc0d   : > { %v1370_v17 = vpop.f32.mrf.mxu1 }
 0xc12   : > { %v1426_v18 = vpop.f32.mrf.mxu2 }
 0xc1b   : > { %v1536_v19 = vpop.f32.mrf.mxu2 }
 0xc1c   : > { %1549 = vrot.lane.b32.xlu2 %v1536_v19, %s3261_s16 }
 0xc23   : > { %v1538_v21 = vpop.f32.mrf.mxu2 }
 0xc26   : > { %v1480_v23 = vpop.f32.mrf.mxu1 }
 0xc27   : > { %1545 = vrot.lane.b32.xlu0 %v1480_v23, %s3262_s24 }
 0xc2e   : > { %v1482_v24 = vpop.f32.mrf.mxu1 }
 0xc2f   : > { %v2275_v24 = vld [vmem:[%s3258_s26 + $0x1] ss:$0 sm:$0xff] }
 0xc65   : > { %v1542_v27 = vpop.permute.xlu2 %1541 }
 0xc66   : > { %v1552_v28 = vsel %vm805_vm9, %v1368_v15, %v1542_v27  ;;  %v2141_v15 = vld [vmem:[%s3199_s8 + $0x20] sm:$0xff] }
 0xc67   : > { %1730 = vmatpush.bf16.msrb.mxu3 %v2141_v15 }
 0xc76   : > { %v1550_v30 = vpop.permute.xlu2 %1549 }
 0xc99   : > { %v1546_v29 = vpop.permute.xlu0 %1545 }
 0xc9a   : > { %v1553_v31 = vsel %vm1040_vm11, %v1552_v28, %v1546_v29 }
 0xc9b   : > { %v1554_v32 = vsel %vm1042_vm12, %v1553_v31, %v1550_v30 }
 0xc9c   : > { %v1560_v33 = vpack.c.bf16 %v1554_v32, %v1554_v32 }
 0xc9e   : > { %2071 = vmatmul.msk.bf16.vlgmr.msrb.gmra.mxu0 %vm701_vm0, %v1560_v33 }
 0xd1b   : > { %v1585_v35 = vpop.f32.mrf.mxu0 }
 0xd1c   : > { %v1589_v36 = vadd.f32 %v1585_v35, %v3020_v20  ;;  %v2140_v20 = vld [vmem:[%s3197_s6 + $0x18] sm:$0xff]  ;;  %v2146_v35 = vld [vmem:[#allocation11 + $0x8] sm:$0xff] }
 0xd1d   : > { %1678 = vmatpush.bf16.msrb.mxu1 %v2140_v20  ;;  %1813 = vmatpush.bf16.msra.mxu2 %v2146_v35 }
 0xd1e   : > { %v3107_v37 = vadd.f32 %v2271_v34, %v1589_v36  ;;  %v2145_v36 = vld [vmem:[#allocation11] sm:$0xff] }
 0xd20   : > { %v1600_v0 = vsel %vm701_vm0, %v3107_v37, 0.0 }
 0xd21   : > { %1601 = vadd.xlane.f32.xlu0 %v1600_v0  ;;  %1679 = vmatpush.bf16.msrb.mxu1 %v2139_v43 }
 0xd22   : > { %1814 = vmatpush.bf16.msra.mxu2 %v2145_v36 }
 0xd23   : > { %v1587_v38 = vpop.f32.mrf.mxu0 }
 0xd94   : > { %v1602_v39 = vpop.xlane.xlu0 %1601 }
 0xd95   : > { %v1603_v7 = vmul.f32 %v1602_v39, %v2891_v8 }
 0xd97   : > { %v1604_v40 = vsub.f32 %v3107_v37, %v1603_v7 }
 0xd99   : > { %v1605_v41 = vmul.f32 %v1604_v40, %v1604_v40  ;;  %v1625_v5 = vmul.f32 %v2272_v63, %v1604_v40 }
 0xd9b   : > { %v1606_v42 = vsel %vm701_vm0, %v1605_v41, 0.0 }
 0xd9c   : > { %1607 = vadd.xlane.f32.xlu2 %v1606_v42 }
 0xe0f   : > { %v1608_v44 = vpop.xlane.xlu2 %1607 }
 0xe10   : > { %v1609_v45 = vmul.f32 %v1608_v44, %v2902_v22 }
 0xe12   : > { %2324 = vrsqrt.f32 %v1609_v45  ;;  %vm1617_vm9 = vcmp.eq.f32.partialorder %v1609_v45, inf  ;;  %v1620_v55 = vand.u32 2147483648, %v1609_v45  ;;  %vm1619_vm10 = vcmp.eq.f32.partialorder %v1609_v45, 0.0 }
 0xe18   : > { %v2325_v46 = vpop.eup %2324 }
 0xe19   : > { %v1611_v47 = vmul.f32 %v2325_v46, %v1609_v45 }
 0xe1b   : > { %v1612_v48 = vmul.f32 %v2325_v46, %v1611_v47 }
 0xe1d   : > { %v1613_v49 = vmul.f32 0.5, %v1612_v48 }
 0xe1f   : > { %v1614_v50 = vsub.f32 1.5, %v1613_v49 }
 0xe21   : > { %v1615_v52 = vmul.f32 %v2325_v46, %v1614_v50 }
 0xe23   : > { %v1616_v54 = vmul.f32 %v1615_v52, %v1609_v45 }
 0xe25   : > { %v1618_v56 = vsel %vm1617_vm9, %v1609_v45, %v1616_v54 }
 0xe26   : > { %v1621_v57 = vsel %vm1619_vm10, %v1620_v55, %v1618_v56  ;;  %v1744_v56 = vld [vmem:[%s3264_s13] sm:$0x1] }
 0xe27   : > { %v1626_v58 = vadd.f32 1e-06, %v1621_v57 }
 0xe29   : > { %2326 = vrcp.f32 %v1626_v58  ;;  %v1638_v62 = vand.u32 2147483648, %v1626_v58  ;;  %v1636_v3 = vand.u32 2147483647, %v1626_v58  ;;  %vm1632_vm12 = vweird.f32 %v1626_v58 }
 0xe2b   : > { %v1639_v1 = vor.u32 1.1754944e-38, %v1638_v62  ;;  %vm1637_vm1 = vcmp.eq.f32.partialorder %v1636_v3, 8.507059e+37 }
 0xe2f   : > { %v2327_v59 = vpop.eup %2326 }
 0xe30   : > { %v1628_v60 = vmul.f32 %v2327_v59, %v1626_v58  ;;  %vm1633_vm11 = vweird.f32 %v2327_v59 }
 0xe31   : > { %vm1634_vm15 = vmor %vm1632_vm12, %vm1633_vm11 }
 0xe32   : > { %v1629_v61 = vsub.f32 1.0, %v1628_v60 }
 0xe34   : > { %v1630_v2 = vmul.f32 %v2327_v59, %v1629_v61  ;;  %v1791_v61 = vld [vmem:[%s3265_s2] sm:$0x1] }
 0xe36   : > { %v1631_v4 = vadd.f32 %v2327_v59, %v1630_v2 }
 0xe38   : > { %v1635_v6 = vsel %vm1634_vm15, %v2327_v59, %v1631_v4 }
 0xe39   : > { %v1640_v10 = vsel %vm1637_vm1, %v1639_v1, %v1635_v6 }
 0xe3a   : > { %v1641_v11 = vmul.f32 %v1640_v10, %v1625_v5 }
 0xe3c   : > { %v1645_v12 = vadd.f32 %v2273_v9, %v1641_v11 }
 0xe3e   : > { %v1651_v13 = vpack.c.bf16 %v1645_v12, %v1645_v12 }
 0xe40   : > { %2087 = vmatmul.msk.bf16.vlgmr.msrb.gmra.mxu1 %vm701_vm0, %v1651_v13 }
 0xebd   : > { %v1681_v17 = vpop.f32.mrf.mxu1 }
 0xebe   : > { %v1682_v18 = vadd.f32 %v2274_v16, %v1681_v17 }
 0xec0   : > { %v1685_v19 = vmax.f32 %v1682_v18, 0.0 }
 0xec2   : > { %v1695_v21 = vpack.c.bf16 %v1685_v19, %v1685_v19 }
 0xec4   : > { %2112 = vmatmul.msk.bf16.vlgmr.msrb.gmra.mxu3 %vm1202_vm4, %v1695_v21 }
 0xec5   : > { %v1683_v23 = vpop.f32.mrf.mxu1 }
 0xf47   : > { %v1732_v25 = vpop.f32.mrf.mxu3 }
 0xf48   : > { %v1736_v26 = vadd.f32 %v1732_v25, %v3107_v37 }
 0xf4a   : > { %v1742_v27 = vadd.f32 %v2275_v24, %v1736_v26 }
 0xf4c   : > { %v1746_v28 = vsel %vm1745_vm2, %v1742_v27, 0.0 }
 0xf4d   : > { %1747 = vadd.xlane.f32.xlu1 %v1746_v28 }
 0xf4f   : > { %v1734_v29 = vpop.f32.mrf.mxu3 }
 0xfc0   : > { %v1748_v30 = vpop.xlane.xlu1 %1747 }
 0xfc1   : > { %v1749_v31 = vmul.f32 %v1748_v30, %v2891_v8 }
 0xfc3   : > { %v1750_v32 = vsub.f32 %v1742_v27, %v1749_v31 }
 0xfc5   : > { %v1751_v33 = vmul.f32 %v1750_v32, %v1750_v32  ;;  %v1768_v54 = vmul.f32 %v1750_v32, %v1743_v51 }
 0xfc7   : > { %v1752_v34 = vsel %vm1745_vm2, %v1751_v33, 0.0 }
 0xfc8   : > { %1753 = vadd.xlane.f32.xlu0 %v1752_v34 }
0x103b   : > { %v1754_v0 = vpop.xlane.xlu0 %1753 }
0x103c   : > { %v1755_v38 = vmul.f32 %v1754_v0, %v2902_v22 }
0x103e   : > { %2328 = vrsqrt.f32 %v1755_v38  ;;  %vm1763_vm3 = vcmp.eq.f32.partialorder %v1755_v38, inf  ;;  %v1766_v8 = vand.u32 2147483648, %v1755_v38  ;;  %vm1765_vm4 = vcmp.eq.f32.partialorder %v1755_v38, 0.0 }
0x1044   : > { %v2329_v37 = vpop.eup %2328 }
0x1045   : > { %v1757_v39 = vmul.f32 %v2329_v37, %v1755_v38 }
0x1047   : > { %v1758_v7 = vmul.f32 %v2329_v37, %v1757_v39 }
0x1049   : > { %v1759_v40 = vmul.f32 0.5, %v1758_v7 }
0x104b   : > { %v1760_v41 = vsub.f32 1.5, %v1759_v40 }
0x104d   : > { %v1761_v42 = vmul.f32 %v2329_v37, %v1760_v41 }
0x104f   : > { %v1762_v20 = vmul.f32 %v1761_v42, %v1755_v38 }
0x1051   : > { %v1764_v43 = vsel %vm1763_vm3, %v1755_v38, %v1762_v20 }
0x1052   : > { %v1767_v44 = vsel %vm1765_vm4, %v1766_v8, %v1764_v43 }
0x1053   : > { %v1769_v45 = vadd.f32 1e-06, %v1767_v44 }
0x1055   : > { %2330 = vrcp.f32 %v1769_v45  ;;  %v1781_v49 = vand.u32 2147483648, %v1769_v45  ;;  %v1779_v50 = vand.u32 2147483647, %v1769_v45  ;;  %vm1775_vm6 = vweird.f32 %v1769_v45 }
0x1057   : > { %v1782_v53 = vor.u32 1.1754944e-38, %v1781_v49  ;;  %vm1780_vm8 = vcmp.eq.f32.partialorder %v1779_v50, 8.507059e+37 }
0x105b   : > { %v2331_v46 = vpop.eup %2330 }
0x105c   : > { %v1771_v47 = vmul.f32 %v2331_v46, %v1769_v45  ;;  %vm1776_vm5 = vweird.f32 %v2331_v46 }
0x105d   : > { %vm1777_vm7 = vmor %vm1775_vm6, %vm1776_vm5 }
0x105e   : > { %v1772_v48 = vsub.f32 1.0, %v1771_v47 }
0x1060   : > { %v1773_v22 = vmul.f32 %v2331_v46, %v1772_v48 }
0x1062   : > { %v1774_v52 = vadd.f32 %v2331_v46, %v1773_v22 }
0x1064   : > { %v1778_v55 = vsel %vm1777_vm7, %v2331_v46, %v1774_v52 }
0x1065   : > { %v1783_v57 = vsel %vm1780_vm8, %v1782_v53, %v1778_v55 }
0x1066   : > { %v1784_v58 = vmul.f32 %v1783_v57, %v1768_v54 }
0x1068   : > { %v1785_v59 = vadd.f32 %v1784_v58, %v1744_v56 }
0x106a   : > { %v1790_v60 = vpack.c.bf16 %v1785_v59, %v1785_v59 }
0x106c   : > { %2122 = vmatmul.msk.bf16.vlgmr.msra.gmra.mxu2 %vm701_vm0, %v1790_v60 }
0x10ef   : > { %v1816_v62 = vpop.f32.mrf.mxu2 }
0x10f0   : > { %v1817_v63 = vadd.f32 %v1816_v62, %v1791_v61 }
0x10f2   : > { %v1821_v2 = vsel %vm1820_vm13, %v1817_v63, -inf }
0x10f3   : > { %1822 = vmax.xlane.f32.xlu2 %v1821_v2 }
0x10f7   : > { %v1818_v3 = vpop.f32.mrf.mxu2 }
0x1166   : > { %v1823_v4 = vpop.xlane.xlu2 %1822 }
0x1167   : > { %v1824_v1 = vsub.f32 %v1817_v63, %v1823_v4 }
0x1169   : > { %v1825_v5 = vmul.f32 1.442695, %v1824_v1 }
0x116b   : > { %2332 = vpow2.f32 %v1825_v5 }
0x1171   : > { %v2333_v6 = vpop.eup %2332 }
0x1172   : > { %v1827_v9 = vsel %vm1820_vm13, %v2333_v6, 0.0 }
0x1173   : > { %1828 = vadd.xlane.f32.xlu0 %v1827_v9 }
0x11e6   : > { %v1829_v10 = vpop.xlane.xlu0 %1828 }
0x11e7   : > { %2334 = vlog2.f32 %v1829_v10 }
0x11ed   : > { %v2335_v11 = vpop.eup %2334 }
0x11ee   : > { %v1831_v12 = vmul.f32 0.6931472, %v2335_v11 }
0x11f0   : > { %v1832_v13 = vsub.f32 %v1824_v1, %v1831_v12 }
0x11f2   : > { %1833 = vst [vmem:[%s692_s15] sm:$0x1] %v1832_v13 }
0x11f3   : > { %2543 = shalt.err (!%p2540_p8)
}
0x11f4   : > { %2167 = dma.vmem_to_hbm [thread:$0]  (%p2808_p4), %s1846_s1, 16, %s1848_s23, %s1835_s17  }
0x11f5 PF: > { %s3268_s14 = sld [smem:[#allocation20_spill]]  ;;  %p3270_p10 = scmp.ge.s32.totalorder %s2598_s30, 2 }
0x11f7   : > { %p2190_p13 = pnand %p3270_p10, %p2812_p6 }
0x11f9   : > { %p2191_p11 = pneg %p2190_p13 }
0x11fb   : > { %s1859_s29 = sand.u32 1, %s3268_s14  }
0x11fc   : > { %s1860_s22 = scalar_lea.sflag [#allocation4], %s1859_s29 }
0x11fd   : > { %2581 = dma.done.wait (%p2191_p11), %s1860_s22, 16  }
0x11fe   : > { %2583 = vsyncadd (%p2191_p11), %s1860_s22, 4294967280  ;;  %s3271_s30 = sld [smem:[#allocation22_spill]]  ;;  %s3274_s27 = smov %s2590_s28 }
0x11ff   : > { %s3272_s21 = sld [smem:[#allocation21_spill]] }
0x1200   : > { %s3273_s29 = sld [smem:[#allocation23_spill]] }
0x1204   : > { %p36_p0 = scmp.ge.s32.totalorder %s3271_s30, 4  }
0x1205   : > { %s3275_s28 = smov %s3272_s21 }
0x1206   :  { %38 = sbr.rel (!%p36_p0) target bundleno = 22 (0x16), region = 178 }
0x120b   :  { %1865 = vsyncpa [#allocation3], 1 }
0x120c   :  { %1867 = vsyncpa [#allocation3 + $0x1], 1 }
0x120d   :  { %1868 = vsyncpa [#allocation6], 1 }
0x120e   :  { %1870 = vsyncpa [#allocation6 + $0x1], 1 }
0x120f   :  { %1871 = vsyncpa [#allocation9], 1 }
0x1210   :  { %1872 = vsyncpa [#allocation12], 1 }
0x1211   :  { %1873 = vsyncpa [#allocation4], 1 }
0x1212   :  { %1875 = vsyncpa [#allocation4 + $0x1], 1 }

</bundles_post_ra>
